<compile_context>
chip_gen: v6e
topology: v6e:2x2x1
jax: 0.10.0
libtpu: 0.0.40
codegen_flags: <defaults>
</compile_context>

<pallas_src>
import functools

import jax
import jax.numpy as jnp
from jax.experimental import pallas as pl
from jax.experimental.pallas import tpu as pltpu


# ----------------------------------------------------------------------------
# Fused Pallas kernel: subgraph layers -> max-pool -> global attention layers
# ----------------------------------------------------------------------------
def vectornet_fused_kernel(*refs, num_subgraph_layers, num_global_layers, num_heads):
    n_in = 2 + 6 * num_subgraph_layers + 14 * num_global_layers
    x_ref = refs[0]            # (1, R, V, F)  R = chunk_polylines * batch_size
    bias_ref = refs[1]         # (R, R)        block-diagonal additive attention bias
    sub_refs = refs[2:2 + 6 * num_subgraph_layers]
    glob_refs = refs[2 + 6 * num_subgraph_layers:n_in]
    o_ref = refs[n_in]         # (1, R, E)

    x = x_ref[0]                                                    # [R, V, F]
    R, V, F = x.shape
    h = x.reshape(R * V, F)                                         # big-M layout

    # ---- PolylineSubGraph layers (all rows at once) ----
    for li in range(num_subgraph_layers):
        w1, b1, g, beta, w2, b2 = (r[...] for r in sub_refs[6 * li:6 * li + 6])
        d = h.shape[-1]
        # node encoder: Linear -> LayerNorm -> ReLU
        z = jnp.dot(h, w1, preferred_element_type=jnp.float32) + b1
        mu = jnp.mean(z, axis=-1, keepdims=True)
        var = jnp.mean((z - mu) ** 2, axis=-1, keepdims=True)
        z = (z - mu) * jax.lax.rsqrt(var + 1e-5) * g + beta
        z = jnp.maximum(z, 0.0)
        # max over the vectors axis of each (polyline, batch) row
        zmax = jnp.max(z.reshape(R, V, d), axis=1)                  # [R, d]
        # edge encoder on [z, broadcast(zmax)] without concat: split weights
        p1 = jnp.dot(z, w2[:d, :], preferred_element_type=jnp.float32)          # [R*V, 2d]
        p2 = jnp.dot(zmax, w2[d:, :], preferred_element_type=jnp.float32) + b2  # [R, 2d]
        h = (p1.reshape(R, V, 2 * d) + p2[:, None, :]).reshape(R * V, 2 * d)

    E = h.shape[-1]
    feats = jnp.max(h.reshape(R, V, E), axis=1)                     # [R, E]

    # ---- GlobalGraph layers: one masked [R, R] attention per head ----
    hd = E // num_heads
    scale = 1.0 / float(hd) ** 0.5
    attn_bias = bias_ref[...]
    xg = feats
    for gi in range(num_global_layers):
        (wk, bk, wq, bq, wv, bv,
         wqi, bqi, wki, bki, wvi, bvi,
         wo, bo) = (r[...] for r in glob_refs[14 * gi:14 * gi + 14])
        # GlobalGraphLayer's own K/Q/V linears, then MHA in_proj (as in PyTorch)
        k0 = jnp.dot(xg, wk, preferred_element_type=jnp.float32) + bk
        q0 = jnp.dot(xg, wq, preferred_element_type=jnp.float32) + bq
        v0 = jnp.dot(xg, wv, preferred_element_type=jnp.float32) + bv
        q = jnp.dot(q0, wqi, preferred_element_type=jnp.float32) + bqi
        k = jnp.dot(k0, wki, preferred_element_type=jnp.float32) + bki
        v = jnp.dot(v0, wvi, preferred_element_type=jnp.float32) + bvi

        o_acc = jnp.zeros((R, E), jnp.float32)
        for hh in range(num_heads):                 # static unroll over heads
            sl = slice(hh * hd, (hh + 1) * hd)
            qh, kh, vh = q[:, sl], k[:, sl], v[:, sl]
            s = jnp.dot(qh, kh.T, preferred_element_type=jnp.float32) * scale + attn_bias
            s = s - jnp.max(s, axis=-1, keepdims=True)
            e = jnp.exp(s)
            p = e * pl.reciprocal(jnp.sum(e, axis=-1, keepdims=True), approx=True)
            oh = jnp.dot(p, vh, preferred_element_type=jnp.float32)  # [R, hd]
            # fold head output into out_proj via split weights (no concat)
            o_acc = o_acc + jnp.dot(oh, wo[sl, :], preferred_element_type=jnp.float32)
        xg = o_acc + bo

    o_ref[0] = xg.astype(o_ref.dtype)


# ----------------------------------------------------------------------------
# Forward pass: thin JAX glue (gathers) around the single fused pallas_call
# ----------------------------------------------------------------------------
def vectornet_forward(polylines, target_index, params, *, num_global_heads):
    """polylines: [P, V, F] (stacked polylines_list), target_index: [B] -> [B, B, E]."""
    P, V, F = polylines.shape
    B = target_index.shape[0]
    num_sub = len(params["sub"])
    num_glob = len(params["glob"])
    E = F * (2 ** num_sub)
    assert E % num_global_heads == 0

    # repeat each polyline over the batch and subtract the target-indexed copy
    rep = jnp.broadcast_to(polylines[:, None, :, :], (P, B, V, F))
    centered = (rep - rep[:, target_index]).astype(jnp.float32)     # [P, B, V, F]

    # chunk polylines so v7x's two TensorCores both get a grid step
    n_chunks = 2 if (P % 2 == 0 and P >= 2) else 1
    chunk_p = P // n_chunks
    R = chunk_p * B
    x = centered.reshape(n_chunks, R, V, F)

    # block-diagonal additive bias: attention only within each polyline's B rows
    # (reproduces the batch_first=False quirk: seq axis = batch, "batch" axis = polyline)
    rid = jnp.arange(R, dtype=jnp.int32) // B
    attn_bias = jnp.where(rid[:, None] == rid[None, :], 0.0, -1e30).astype(jnp.float32)

    const_map = lambda i: (0, 0)
    flat_params = []
    in_specs = [
        pl.BlockSpec((1, R, V, F), lambda i: (i, 0, 0, 0)),
        pl.BlockSpec((R, R), const_map),
    ]
    for layer in params["sub"]:
        for a in layer:
            flat_params.append(a)
            in_specs.append(pl.BlockSpec(a.shape, const_map))
    glob_order = ("wk", "bk", "wq", "bq", "wv", "bv",
                  "wqi", "bqi", "wki", "bki", "wvi", "bvi", "wo", "bo")
    for layer in params["glob"]:
        for name in glob_order:
            a = layer[name]
            flat_params.append(a)
            in_specs.append(pl.BlockSpec(a.shape, const_map))

    kernel = functools.partial(
        vectornet_fused_kernel,
        num_subgraph_layers=num_sub,
        num_global_layers=num_glob,
        num_heads=num_global_heads,
    )
    out = pl.pallas_call(
        kernel,
        out_shape=jax.ShapeDtypeStruct((n_chunks, R, E), jnp.float32),
        grid=(n_chunks,),
        in_specs=in_specs,
        out_specs=pl.BlockSpec((1, R, E), lambda i: (i, 0, 0)),
        compiler_params=pltpu.CompilerParams(dimension_semantics=("parallel",)),
    )(x, attn_bias, *flat_params)

    # exact reproduction of `polyline_features[:, target_index, :]` on [B, P, E]
    xg = out.reshape(P, B, E)                                       # polyline-major
    y = jnp.transpose(xg, (1, 0, 2))                                # [B, P, E]
    return y[:, target_index, :]                                    # [B, B, E]


# ----------------------------------------------------------------------------
# Parameter construction (deterministic, synthetic)
# ----------------------------------------------------------------------------
def init_params(key, num_features, num_subgraph_layers, num_global_layers, emb_dim):
    keys = iter(jax.random.split(key, 4 * num_subgraph_layers + 16 * num_global_layers + 8))

    def linear(k, din, dout):
        kw, kb = jax.random.split(k)
        w = jax.random.normal(kw, (din, dout), jnp.float32) * (1.0 / jnp.sqrt(din))
        b = jax.random.normal(kb, (1, dout), jnp.float32) * 0.02
        return w, b  # stored as (in, out) so kernels compute x @ w + b

    sub_layers = []
    for i in range(num_subgraph_layers):
        d = num_features * (2 ** i)
        w1, b1 = linear(next(keys), d, d)
        g = jnp.ones((1, d), jnp.float32)
        beta = jnp.zeros((1, d), jnp.float32)
        w2, b2 = linear(next(keys), 2 * d, 2 * d)
        sub_layers.append((w1, b1, g, beta, w2, b2))

    global_layers = []
    for _ in range(num_global_layers):
        layer = {}
        for name in ("wk", "wq", "wv", "wqi", "wki", "wvi", "wo"):
            w, b = linear(next(keys), emb_dim, emb_dim)
            layer[name] = w
            layer[name.replace("w", "b", 1)] = b
        global_layers.append(layer)

    return {"sub": sub_layers, "glob": global_layers}


# ----------------------------------------------------------------------------
if __name__ == "__main__":
    num_vectors = 8           # num_past_steps
    num_features = 8
    num_subgraph_layers = 2
    num_global_layers = 1
    num_global_heads = 4
    num_polylines = 6
    batch_size = 4
    emb_dim = num_features * (2 ** num_subgraph_layers)   # 32

    key = jax.random.PRNGKey(0)
    k_params, k_poly = jax.random.split(key)
    params = init_params(k_params, num_features, num_subgraph_layers,
                         num_global_layers, emb_dim)

    # polylines_list stacked into one array: [num_polylines, num_vectors, num_features]
    polylines = jax.random.normal(k_poly, (num_polylines, num_vectors, num_features),
                                  jnp.float32)
    target_index = jnp.arange(batch_size, dtype=jnp.int32)

    forward = jax.jit(functools.partial(vectornet_forward,
                                        num_global_heads=num_global_heads))
    out = forward(polylines, target_index, params)
    jax.block_until_ready(out)
    assert out.shape == (batch_size, batch_size, emb_dim)
    print("KERNEL_OK")
</pallas_src>

<mosaic_0001>
module attributes {stable_mosaic.version = 11 : i64} {
  func.func @vectornet_fused_kernel(%arg0: i32, %arg1: memref<1x12x8x8xf32, #tpu.memory_space<vmem>>, %arg2: memref<12x12xf32, #tpu.memory_space<vmem>>, %arg3: memref<8x8xf32, #tpu.memory_space<vmem>>, %arg4: memref<1x8xf32, #tpu.memory_space<vmem>>, %arg5: memref<1x8xf32, #tpu.memory_space<vmem>>, %arg6: memref<1x8xf32, #tpu.memory_space<vmem>>, %arg7: memref<16x16xf32, #tpu.memory_space<vmem>>, %arg8: memref<1x16xf32, #tpu.memory_space<vmem>>, %arg9: memref<16x16xf32, #tpu.memory_space<vmem>>, %arg10: memref<1x16xf32, #tpu.memory_space<vmem>>, %arg11: memref<1x16xf32, #tpu.memory_space<vmem>>, %arg12: memref<1x16xf32, #tpu.memory_space<vmem>>, %arg13: memref<32x32xf32, #tpu.memory_space<vmem>>, %arg14: memref<1x32xf32, #tpu.memory_space<vmem>>, %arg15: memref<32x32xf32, #tpu.memory_space<vmem>>, %arg16: memref<1x32xf32, #tpu.memory_space<vmem>>, %arg17: memref<32x32xf32, #tpu.memory_space<vmem>>, %arg18: memref<1x32xf32, #tpu.memory_space<vmem>>, %arg19: memref<32x32xf32, #tpu.memory_space<vmem>>, %arg20: memref<1x32xf32, #tpu.memory_space<vmem>>, %arg21: memref<32x32xf32, #tpu.memory_space<vmem>>, %arg22: memref<1x32xf32, #tpu.memory_space<vmem>>, %arg23: memref<32x32xf32, #tpu.memory_space<vmem>>, %arg24: memref<1x32xf32, #tpu.memory_space<vmem>>, %arg25: memref<32x32xf32, #tpu.memory_space<vmem>>, %arg26: memref<1x32xf32, #tpu.memory_space<vmem>>, %arg27: memref<32x32xf32, #tpu.memory_space<vmem>>, %arg28: memref<1x32xf32, #tpu.memory_space<vmem>>, %arg29: memref<1x12x32xf32, #tpu.memory_space<vmem>>) attributes {dimension_semantics = [#tpu.dimension_semantics<parallel>], iteration_bounds = array<i64: 2>, scalar_prefetch = 0 : i64, scratch_operands = 0 : i64, tpu.core_type = #tpu.core_type<tc>, window_params = [{transform_indices = @transform_0, window_bounds = array<i64: 1, 12, 8, 8>}, {pipeline_mode = #tpu.pipeline_mode<synchronous>, transform_indices = @transform_1, window_bounds = array<i64: 12, 12>}, {pipeline_mode = #tpu.pipeline_mode<synchronous>, transform_indices = @transform_2, window_bounds = array<i64: 8, 8>}, {pipeline_mode = #tpu.pipeline_mode<synchronous>, transform_indices = @transform_3, window_bounds = array<i64: 1, 8>}, {pipeline_mode = #tpu.pipeline_mode<synchronous>, transform_indices = @transform_4, window_bounds = array<i64: 1, 8>}, {pipeline_mode = #tpu.pipeline_mode<synchronous>, transform_indices = @transform_5, window_bounds = array<i64: 1, 8>}, {pipeline_mode = #tpu.pipeline_mode<synchronous>, transform_indices = @transform_6, window_bounds = array<i64: 16, 16>}, {pipeline_mode = #tpu.pipeline_mode<synchronous>, transform_indices = @transform_7, window_bounds = array<i64: 1, 16>}, {pipeline_mode = #tpu.pipeline_mode<synchronous>, transform_indices = @transform_8, window_bounds = array<i64: 16, 16>}, {pipeline_mode = #tpu.pipeline_mode<synchronous>, transform_indices = @transform_9, window_bounds = array<i64: 1, 16>}, {pipeline_mode = #tpu.pipeline_mode<synchronous>, transform_indices = @transform_10, window_bounds = array<i64: 1, 16>}, {pipeline_mode = #tpu.pipeline_mode<synchronous>, transform_indices = @transform_11, window_bounds = array<i64: 1, 16>}, {pipeline_mode = #tpu.pipeline_mode<synchronous>, transform_indices = @transform_12, window_bounds = array<i64: 32, 32>}, {pipeline_mode = #tpu.pipeline_mode<synchronous>, transform_indices = @transform_13, window_bounds = array<i64: 1, 32>}, {pipeline_mode = #tpu.pipeline_mode<synchronous>, transform_indices = @transform_14, window_bounds = array<i64: 32, 32>}, {pipeline_mode = #tpu.pipeline_mode<synchronous>, transform_indices = @transform_15, window_bounds = array<i64: 1, 32>}, {pipeline_mode = #tpu.pipeline_mode<synchronous>, transform_indices = @transform_16, window_bounds = array<i64: 32, 32>}, {pipeline_mode = #tpu.pipeline_mode<synchronous>, transform_indices = @transform_17, window_bounds = array<i64: 1, 32>}, {pipeline_mode = #tpu.pipeline_mode<synchronous>, transform_indices = @transform_18, window_bounds = array<i64: 32, 32>}, {pipeline_mode = #tpu.pipeline_mode<synchronous>, transform_indices = @transform_19, window_bounds = array<i64: 1, 32>}, {pipeline_mode = #tpu.pipeline_mode<synchronous>, transform_indices = @transform_20, window_bounds = array<i64: 32, 32>}, {pipeline_mode = #tpu.pipeline_mode<synchronous>, transform_indices = @transform_21, window_bounds = array<i64: 1, 32>}, {pipeline_mode = #tpu.pipeline_mode<synchronous>, transform_indices = @transform_22, window_bounds = array<i64: 32, 32>}, {pipeline_mode = #tpu.pipeline_mode<synchronous>, transform_indices = @transform_23, window_bounds = array<i64: 1, 32>}, {pipeline_mode = #tpu.pipeline_mode<synchronous>, transform_indices = @transform_24, window_bounds = array<i64: 32, 32>}, {pipeline_mode = #tpu.pipeline_mode<synchronous>, transform_indices = @transform_25, window_bounds = array<i64: 1, 32>}, {pipeline_mode = #tpu.pipeline_mode<synchronous>, transform_indices = @transform_26, window_bounds = array<i64: 32, 32>}, {pipeline_mode = #tpu.pipeline_mode<synchronous>, transform_indices = @transform_27, window_bounds = array<i64: 1, 32>}, {transform_indices = @transform_28, window_bounds = array<i64: 1, 12, 32>}]} {
    %c0 = arith.constant 0 : index
    %c0_0 = arith.constant 0 : index
    %c0_1 = arith.constant 0 : index
    %c0_2 = arith.constant 0 : index
    %0 = vector.load %arg1[%c0, %c0_0, %c0_1, %c0_2] : memref<1x12x8x8xf32, #tpu.memory_space<vmem>>, vector<1x12x8x8xf32>
    %1 = vector.shape_cast %0 : vector<1x12x8x8xf32> to vector<12x8x8xf32>
    %2 = vector.shape_cast %1 : vector<12x8x8xf32> to vector<96x8xf32>
    %c0_3 = arith.constant 0 : index
    %c0_4 = arith.constant 0 : index
    %3 = vector.load %arg3[%c0_3, %c0_4] : memref<8x8xf32, #tpu.memory_space<vmem>>, vector<8x8xf32>
    %c0_5 = arith.constant 0 : index
    %c0_6 = arith.constant 0 : index
    %4 = vector.load %arg4[%c0_5, %c0_6] : memref<1x8xf32, #tpu.memory_space<vmem>>, vector<1x8xf32>
    %c0_7 = arith.constant 0 : index
    %c0_8 = arith.constant 0 : index
    %5 = vector.load %arg5[%c0_7, %c0_8] : memref<1x8xf32, #tpu.memory_space<vmem>>, vector<1x8xf32>
    %c0_9 = arith.constant 0 : index
    %c0_10 = arith.constant 0 : index
    %6 = vector.load %arg6[%c0_9, %c0_10] : memref<1x8xf32, #tpu.memory_space<vmem>>, vector<1x8xf32>
    %c0_11 = arith.constant 0 : index
    %c0_12 = arith.constant 0 : index
    %7 = vector.load %arg7[%c0_11, %c0_12] : memref<16x16xf32, #tpu.memory_space<vmem>>, vector<16x16xf32>
    %c0_13 = arith.constant 0 : index
    %c0_14 = arith.constant 0 : index
    %8 = vector.load %arg8[%c0_13, %c0_14] : memref<1x16xf32, #tpu.memory_space<vmem>>, vector<1x16xf32>
    %cst = arith.constant dense<0.000000e+00> : vector<96x8xf32>
    %9 = tpu.matmul %2, %3, %cst {dimension_numbers = #tpu.dot_dimension_numbers<[1], [0], [0], [1], [0, 0, 1, 1], [], []>} : vector<96x8xf32>, vector<8x8xf32>, vector<96x8xf32> -> vector<96x8xf32>
    %10 = vector.broadcast %4 : vector<1x8xf32> to vector<96x8xf32>
    %11 = arith.addf %9, %10 : vector<96x8xf32>
    %cst_15 = arith.constant dense<0.000000e+00> : vector<96xf32>
    %12 = vector.multi_reduction <add>, %11, %cst_15 [1] : vector<96x8xf32> to vector<96xf32>
    %13 = vector.shape_cast %12 : vector<96xf32> to vector<96x1xf32>
    %cst_16 = arith.constant 8.000000e+00 : f32
    %14 = vector.broadcast %cst_16 : f32 to vector<96x1xf32>
    %15 = arith.divf %13, %14 : vector<96x1xf32>
    %16 = vector.broadcast %15 : vector<96x1xf32> to vector<96x8xf32>
    %17 = arith.subf %11, %16 : vector<96x8xf32>
    %18 = arith.mulf %17, %17 : vector<96x8xf32>
    %cst_17 = arith.constant dense<0.000000e+00> : vector<96xf32>
    %19 = vector.multi_reduction <add>, %18, %cst_17 [1] : vector<96x8xf32> to vector<96xf32>
    %20 = vector.shape_cast %19 : vector<96xf32> to vector<96x1xf32>
    %cst_18 = arith.constant 8.000000e+00 : f32
    %21 = vector.broadcast %cst_18 : f32 to vector<96x1xf32>
    %22 = arith.divf %20, %21 : vector<96x1xf32>
    %23 = vector.broadcast %15 : vector<96x1xf32> to vector<96x8xf32>
    %24 = arith.subf %11, %23 : vector<96x8xf32>
    %cst_19 = arith.constant 9.99999974E-6 : f32
    %25 = vector.broadcast %cst_19 : f32 to vector<96x1xf32>
    %26 = arith.addf %22, %25 : vector<96x1xf32>
    %27 = math.rsqrt %26 : vector<96x1xf32>
    %28 = vector.broadcast %27 : vector<96x1xf32> to vector<96x8xf32>
    %29 = arith.mulf %24, %28 : vector<96x8xf32>
    %30 = vector.broadcast %5 : vector<1x8xf32> to vector<96x8xf32>
    %31 = arith.mulf %29, %30 : vector<96x8xf32>
    %32 = vector.broadcast %6 : vector<1x8xf32> to vector<96x8xf32>
    %33 = arith.addf %31, %32 : vector<96x8xf32>
    %cst_20 = arith.constant 0.000000e+00 : f32
    %34 = vector.broadcast %cst_20 : f32 to vector<96x8xf32>
    %35 = arith.maximumf %33, %34 : vector<96x8xf32>
    %36 = vector.shape_cast %35 : vector<96x8xf32> to vector<12x8x8xf32>
    %cst_21 = arith.constant dense<0xFF800000> : vector<12x8xf32>
    %37 = vector.multi_reduction <maximumf>, %36, %cst_21 [1] : vector<12x8x8xf32> to vector<12x8xf32>
    %38 = vector.extract_strided_slice %7 {offsets = [0, 0], sizes = [8, 16], strides = [1, 1]} : vector<16x16xf32> to vector<8x16xf32>
    %cst_22 = arith.constant dense<0.000000e+00> : vector<96x16xf32>
    %39 = tpu.matmul %35, %38, %cst_22 {dimension_numbers = #tpu.dot_dimension_numbers<[1], [0], [0], [1], [0, 0, 1, 1], [], []>} : vector<96x8xf32>, vector<8x16xf32>, vector<96x16xf32> -> vector<96x16xf32>
    %40 = vector.extract_strided_slice %7 {offsets = [8, 0], sizes = [8, 16], strides = [1, 1]} : vector<16x16xf32> to vector<8x16xf32>
    %cst_23 = arith.constant dense<0.000000e+00> : vector<12x16xf32>
    %41 = tpu.matmul %37, %40, %cst_23 {dimension_numbers = #tpu.dot_dimension_numbers<[1], [0], [0], [1], [0, 0, 1, 1], [], []>} : vector<12x8xf32>, vector<8x16xf32>, vector<12x16xf32> -> vector<12x16xf32>
    %42 = vector.broadcast %8 : vector<1x16xf32> to vector<12x16xf32>
    %43 = arith.addf %41, %42 : vector<12x16xf32>
    %44 = vector.shape_cast %39 : vector<96x16xf32> to vector<12x8x16xf32>
    %45 = vector.shape_cast %43 : vector<12x16xf32> to vector<12x1x16xf32>
    %46 = vector.broadcast %45 : vector<12x1x16xf32> to vector<12x8x16xf32>
    %47 = arith.addf %44, %46 : vector<12x8x16xf32>
    %48 = vector.shape_cast %47 : vector<12x8x16xf32> to vector<96x16xf32>
    %c0_24 = arith.constant 0 : index
    %c0_25 = arith.constant 0 : index
    %49 = vector.load %arg9[%c0_24, %c0_25] : memref<16x16xf32, #tpu.memory_space<vmem>>, vector<16x16xf32>
    %c0_26 = arith.constant 0 : index
    %c0_27 = arith.constant 0 : index
    %50 = vector.load %arg10[%c0_26, %c0_27] : memref<1x16xf32, #tpu.memory_space<vmem>>, vector<1x16xf32>
    %c0_28 = arith.constant 0 : index
    %c0_29 = arith.constant 0 : index
    %51 = vector.load %arg11[%c0_28, %c0_29] : memref<1x16xf32, #tpu.memory_space<vmem>>, vector<1x16xf32>
    %c0_30 = arith.constant 0 : index
    %c0_31 = arith.constant 0 : index
    %52 = vector.load %arg12[%c0_30, %c0_31] : memref<1x16xf32, #tpu.memory_space<vmem>>, vector<1x16xf32>
    %c0_32 = arith.constant 0 : index
    %c0_33 = arith.constant 0 : index
    %53 = vector.load %arg13[%c0_32, %c0_33] : memref<32x32xf32, #tpu.memory_space<vmem>>, vector<32x32xf32>
    %c0_34 = arith.constant 0 : index
    %c0_35 = arith.constant 0 : index
    %54 = vector.load %arg14[%c0_34, %c0_35] : memref<1x32xf32, #tpu.memory_space<vmem>>, vector<1x32xf32>
    %cst_36 = arith.constant dense<0.000000e+00> : vector<96x16xf32>
    %55 = tpu.matmul %48, %49, %cst_36 {dimension_numbers = #tpu.dot_dimension_numbers<[1], [0], [0], [1], [0, 0, 1, 1], [], []>} : vector<96x16xf32>, vector<16x16xf32>, vector<96x16xf32> -> vector<96x16xf32>
    %56 = vector.broadcast %50 : vector<1x16xf32> to vector<96x16xf32>
    %57 = arith.addf %55, %56 : vector<96x16xf32>
    %cst_37 = arith.constant dense<0.000000e+00> : vector<96xf32>
    %58 = vector.multi_reduction <add>, %57, %cst_37 [1] : vector<96x16xf32> to vector<96xf32>
    %59 = vector.shape_cast %58 : vector<96xf32> to vector<96x1xf32>
    %cst_38 = arith.constant 1.600000e+01 : f32
    %60 = vector.broadcast %cst_38 : f32 to vector<96x1xf32>
    %61 = arith.divf %59, %60 : vector<96x1xf32>
    %62 = vector.broadcast %61 : vector<96x1xf32> to vector<96x16xf32>
    %63 = arith.subf %57, %62 : vector<96x16xf32>
    %64 = arith.mulf %63, %63 : vector<96x16xf32>
    %cst_39 = arith.constant dense<0.000000e+00> : vector<96xf32>
    %65 = vector.multi_reduction <add>, %64, %cst_39 [1] : vector<96x16xf32> to vector<96xf32>
    %66 = vector.shape_cast %65 : vector<96xf32> to vector<96x1xf32>
    %cst_40 = arith.constant 1.600000e+01 : f32
    %67 = vector.broadcast %cst_40 : f32 to vector<96x1xf32>
    %68 = arith.divf %66, %67 : vector<96x1xf32>
    %69 = vector.broadcast %61 : vector<96x1xf32> to vector<96x16xf32>
    %70 = arith.subf %57, %69 : vector<96x16xf32>
    %cst_41 = arith.constant 9.99999974E-6 : f32
    %71 = vector.broadcast %cst_41 : f32 to vector<96x1xf32>
    %72 = arith.addf %68, %71 : vector<96x1xf32>
    %73 = math.rsqrt %72 : vector<96x1xf32>
    %74 = vector.broadcast %73 : vector<96x1xf32> to vector<96x16xf32>
    %75 = arith.mulf %70, %74 : vector<96x16xf32>
    %76 = vector.broadcast %51 : vector<1x16xf32> to vector<96x16xf32>
    %77 = arith.mulf %75, %76 : vector<96x16xf32>
    %78 = vector.broadcast %52 : vector<1x16xf32> to vector<96x16xf32>
    %79 = arith.addf %77, %78 : vector<96x16xf32>
    %cst_42 = arith.constant 0.000000e+00 : f32
    %80 = vector.broadcast %cst_42 : f32 to vector<96x16xf32>
    %81 = arith.maximumf %79, %80 : vector<96x16xf32>
    %82 = vector.shape_cast %81 : vector<96x16xf32> to vector<12x8x16xf32>
    %cst_43 = arith.constant dense<0xFF800000> : vector<12x16xf32>
    %83 = vector.multi_reduction <maximumf>, %82, %cst_43 [1] : vector<12x8x16xf32> to vector<12x16xf32>
    %84 = vector.extract_strided_slice %53 {offsets = [0, 0], sizes = [16, 32], strides = [1, 1]} : vector<32x32xf32> to vector<16x32xf32>
    %cst_44 = arith.constant dense<0.000000e+00> : vector<96x32xf32>
    %85 = tpu.matmul %81, %84, %cst_44 {dimension_numbers = #tpu.dot_dimension_numbers<[1], [0], [0], [1], [0, 0, 1, 1], [], []>} : vector<96x16xf32>, vector<16x32xf32>, vector<96x32xf32> -> vector<96x32xf32>
    %86 = vector.extract_strided_slice %53 {offsets = [16, 0], sizes = [16, 32], strides = [1, 1]} : vector<32x32xf32> to vector<16x32xf32>
    %cst_45 = arith.constant dense<0.000000e+00> : vector<12x32xf32>
    %87 = tpu.matmul %83, %86, %cst_45 {dimension_numbers = #tpu.dot_dimension_numbers<[1], [0], [0], [1], [0, 0, 1, 1], [], []>} : vector<12x16xf32>, vector<16x32xf32>, vector<12x32xf32> -> vector<12x32xf32>
    %88 = vector.broadcast %54 : vector<1x32xf32> to vector<12x32xf32>
    %89 = arith.addf %87, %88 : vector<12x32xf32>
    %90 = vector.shape_cast %85 : vector<96x32xf32> to vector<12x8x32xf32>
    %91 = vector.shape_cast %89 : vector<12x32xf32> to vector<12x1x32xf32>
    %92 = vector.broadcast %91 : vector<12x1x32xf32> to vector<12x8x32xf32>
    %93 = arith.addf %90, %92 : vector<12x8x32xf32>
    %94 = vector.shape_cast %93 : vector<12x8x32xf32> to vector<96x32xf32>
    %95 = vector.shape_cast %94 : vector<96x32xf32> to vector<12x8x32xf32>
    %cst_46 = arith.constant dense<0xFF800000> : vector<12x32xf32>
    %96 = vector.multi_reduction <maximumf>, %95, %cst_46 [1] : vector<12x8x32xf32> to vector<12x32xf32>
    %c0_47 = arith.constant 0 : index
    %c0_48 = arith.constant 0 : index
    %97 = vector.load %arg2[%c0_47, %c0_48] : memref<12x12xf32, #tpu.memory_space<vmem>>, vector<12x12xf32>
    %c0_49 = arith.constant 0 : index
    %c0_50 = arith.constant 0 : index
    %98 = vector.load %arg15[%c0_49, %c0_50] : memref<32x32xf32, #tpu.memory_space<vmem>>, vector<32x32xf32>
    %c0_51 = arith.constant 0 : index
    %c0_52 = arith.constant 0 : index
    %99 = vector.load %arg16[%c0_51, %c0_52] : memref<1x32xf32, #tpu.memory_space<vmem>>, vector<1x32xf32>
    %c0_53 = arith.constant 0 : index
    %c0_54 = arith.constant 0 : index
    %100 = vector.load %arg17[%c0_53, %c0_54] : memref<32x32xf32, #tpu.memory_space<vmem>>, vector<32x32xf32>
    %c0_55 = arith.constant 0 : index
    %c0_56 = arith.constant 0 : index
    %101 = vector.load %arg18[%c0_55, %c0_56] : memref<1x32xf32, #tpu.memory_space<vmem>>, vector<1x32xf32>
    %c0_57 = arith.constant 0 : index
    %c0_58 = arith.constant 0 : index
    %102 = vector.load %arg19[%c0_57, %c0_58] : memref<32x32xf32, #tpu.memory_space<vmem>>, vector<32x32xf32>
    %c0_59 = arith.constant 0 : index
    %c0_60 = arith.constant 0 : index
    %103 = vector.load %arg20[%c0_59, %c0_60] : memref<1x32xf32, #tpu.memory_space<vmem>>, vector<1x32xf32>
    %c0_61 = arith.constant 0 : index
    %c0_62 = arith.constant 0 : index
    %104 = vector.load %arg21[%c0_61, %c0_62] : memref<32x32xf32, #tpu.memory_space<vmem>>, vector<32x32xf32>
    %c0_63 = arith.constant 0 : index
    %c0_64 = arith.constant 0 : index
    %105 = vector.load %arg22[%c0_63, %c0_64] : memref<1x32xf32, #tpu.memory_space<vmem>>, vector<1x32xf32>
    %c0_65 = arith.constant 0 : index
    %c0_66 = arith.constant 0 : index
    %106 = vector.load %arg23[%c0_65, %c0_66] : memref<32x32xf32, #tpu.memory_space<vmem>>, vector<32x32xf32>
    %c0_67 = arith.constant 0 : index
    %c0_68 = arith.constant 0 : index
    %107 = vector.load %arg24[%c0_67, %c0_68] : memref<1x32xf32, #tpu.memory_space<vmem>>, vector<1x32xf32>
    %c0_69 = arith.constant 0 : index
    %c0_70 = arith.constant 0 : index
    %108 = vector.load %arg25[%c0_69, %c0_70] : memref<32x32xf32, #tpu.memory_space<vmem>>, vector<32x32xf32>
    %c0_71 = arith.constant 0 : index
    %c0_72 = arith.constant 0 : index
    %109 = vector.load %arg26[%c0_71, %c0_72] : memref<1x32xf32, #tpu.memory_space<vmem>>, vector<1x32xf32>
    %c0_73 = arith.constant 0 : index
    %c0_74 = arith.constant 0 : index
    %110 = vector.load %arg27[%c0_73, %c0_74] : memref<32x32xf32, #tpu.memory_space<vmem>>, vector<32x32xf32>
    %c0_75 = arith.constant 0 : index
    %c0_76 = arith.constant 0 : index
    %111 = vector.load %arg28[%c0_75, %c0_76] : memref<1x32xf32, #tpu.memory_space<vmem>>, vector<1x32xf32>
    %cst_77 = arith.constant dense<0.000000e+00> : vector<12x32xf32>
    %112 = tpu.matmul %96, %98, %cst_77 {dimension_numbers = #tpu.dot_dimension_numbers<[1], [0], [0], [1], [0, 0, 1, 1], [], []>} : vector<12x32xf32>, vector<32x32xf32>, vector<12x32xf32> -> vector<12x32xf32>
    %113 = vector.broadcast %99 : vector<1x32xf32> to vector<12x32xf32>
    %114 = arith.addf %112, %113 : vector<12x32xf32>
    %cst_78 = arith.constant dense<0.000000e+00> : vector<12x32xf32>
    %115 = tpu.matmul %96, %100, %cst_78 {dimension_numbers = #tpu.dot_dimension_numbers<[1], [0], [0], [1], [0, 0, 1, 1], [], []>} : vector<12x32xf32>, vector<32x32xf32>, vector<12x32xf32> -> vector<12x32xf32>
    %116 = vector.broadcast %101 : vector<1x32xf32> to vector<12x32xf32>
    %117 = arith.addf %115, %116 : vector<12x32xf32>
    %cst_79 = arith.constant dense<0.000000e+00> : vector<12x32xf32>
    %118 = tpu.matmul %96, %102, %cst_79 {dimension_numbers = #tpu.dot_dimension_numbers<[1], [0], [0], [1], [0, 0, 1, 1], [], []>} : vector<12x32xf32>, vector<32x32xf32>, vector<12x32xf32> -> vector<12x32xf32>
    %119 = vector.broadcast %103 : vector<1x32xf32> to vector<12x32xf32>
    %120 = arith.addf %118, %119 : vector<12x32xf32>
    %cst_80 = arith.constant dense<0.000000e+00> : vector<12x32xf32>
    %121 = tpu.matmul %117, %104, %cst_80 {dimension_numbers = #tpu.dot_dimension_numbers<[1], [0], [0], [1], [0, 0, 1, 1], [], []>} : vector<12x32xf32>, vector<32x32xf32>, vector<12x32xf32> -> vector<12x32xf32>
    %122 = vector.broadcast %105 : vector<1x32xf32> to vector<12x32xf32>
    %123 = arith.addf %121, %122 : vector<12x32xf32>
    %cst_81 = arith.constant dense<0.000000e+00> : vector<12x32xf32>
    %124 = tpu.matmul %114, %106, %cst_81 {dimension_numbers = #tpu.dot_dimension_numbers<[1], [0], [0], [1], [0, 0, 1, 1], [], []>} : vector<12x32xf32>, vector<32x32xf32>, vector<12x32xf32> -> vector<12x32xf32>
    %125 = vector.broadcast %107 : vector<1x32xf32> to vector<12x32xf32>
    %126 = arith.addf %124, %125 : vector<12x32xf32>
    %cst_82 = arith.constant dense<0.000000e+00> : vector<12x32xf32>
    %127 = tpu.matmul %120, %108, %cst_82 {dimension_numbers = #tpu.dot_dimension_numbers<[1], [0], [0], [1], [0, 0, 1, 1], [], []>} : vector<12x32xf32>, vector<32x32xf32>, vector<12x32xf32> -> vector<12x32xf32>
    %128 = vector.broadcast %109 : vector<1x32xf32> to vector<12x32xf32>
    %129 = arith.addf %127, %128 : vector<12x32xf32>
    %cst_83 = arith.constant 0.000000e+00 : f32
    %130 = vector.broadcast %cst_83 : f32 to vector<12x32xf32>
    %131 = vector.extract_strided_slice %123 {offsets = [0, 0], sizes = [12, 8], strides = [1, 1]} : vector<12x32xf32> to vector<12x8xf32>
    %132 = vector.extract_strided_slice %126 {offsets = [0, 0], sizes = [12, 8], strides = [1, 1]} : vector<12x32xf32> to vector<12x8xf32>
    %133 = vector.extract_strided_slice %129 {offsets = [0, 0], sizes = [12, 8], strides = [1, 1]} : vector<12x32xf32> to vector<12x8xf32>
    %134 = tpu.transpose %132, [1, 0] : vector<12x8xf32> -> vector<8x12xf32>
    %cst_84 = arith.constant dense<0.000000e+00> : vector<12x12xf32>
    %135 = tpu.matmul %131, %134, %cst_84 {dimension_numbers = #tpu.dot_dimension_numbers<[1], [0], [0], [1], [0, 0, 1, 1], [], []>} : vector<12x8xf32>, vector<8x12xf32>, vector<12x12xf32> -> vector<12x12xf32>
    %cst_85 = arith.constant 0.353553385 : f32
    %136 = vector.broadcast %cst_85 : f32 to vector<12x12xf32>
    %137 = arith.mulf %135, %136 : vector<12x12xf32>
    %138 = arith.addf %137, %97 : vector<12x12xf32>
    %cst_86 = arith.constant dense<0xFF800000> : vector<12xf32>
    %139 = vector.multi_reduction <maximumf>, %138, %cst_86 [1] : vector<12x12xf32> to vector<12xf32>
    %140 = vector.shape_cast %139 : vector<12xf32> to vector<12x1xf32>
    %141 = vector.broadcast %140 : vector<12x1xf32> to vector<12x12xf32>
    %142 = arith.subf %138, %141 : vector<12x12xf32>
    %143 = math.exp %142 : vector<12x12xf32>
    %cst_87 = arith.constant dense<0.000000e+00> : vector<12xf32>
    %144 = vector.multi_reduction <add>, %143, %cst_87 [1] : vector<12x12xf32> to vector<12xf32>
    %145 = vector.shape_cast %144 : vector<12xf32> to vector<12x1xf32>
    %146 = tpu.reciprocal %145 {approx = true} : vector<12x1xf32> -> vector<12x1xf32>
    %147 = vector.broadcast %146 : vector<12x1xf32> to vector<12x12xf32>
    %148 = arith.mulf %143, %147 : vector<12x12xf32>
    %cst_88 = arith.constant dense<0.000000e+00> : vector<12x8xf32>
    %149 = tpu.matmul %148, %133, %cst_88 {dimension_numbers = #tpu.dot_dimension_numbers<[1], [0], [0], [1], [0, 0, 1, 1], [], []>} : vector<12x12xf32>, vector<12x8xf32>, vector<12x8xf32> -> vector<12x8xf32>
    %150 = vector.extract_strided_slice %110 {offsets = [0, 0], sizes = [8, 32], strides = [1, 1]} : vector<32x32xf32> to vector<8x32xf32>
    %cst_89 = arith.constant dense<0.000000e+00> : vector<12x32xf32>
    %151 = tpu.matmul %149, %150, %cst_89 {dimension_numbers = #tpu.dot_dimension_numbers<[1], [0], [0], [1], [0, 0, 1, 1], [], []>} : vector<12x8xf32>, vector<8x32xf32>, vector<12x32xf32> -> vector<12x32xf32>
    %152 = arith.addf %130, %151 : vector<12x32xf32>
    %153 = vector.extract_strided_slice %123 {offsets = [0, 8], sizes = [12, 8], strides = [1, 1]} : vector<12x32xf32> to vector<12x8xf32>
    %154 = vector.extract_strided_slice %126 {offsets = [0, 8], sizes = [12, 8], strides = [1, 1]} : vector<12x32xf32> to vector<12x8xf32>
    %155 = vector.extract_strided_slice %129 {offsets = [0, 8], sizes = [12, 8], strides = [1, 1]} : vector<12x32xf32> to vector<12x8xf32>
    %156 = tpu.transpose %154, [1, 0] : vector<12x8xf32> -> vector<8x12xf32>
    %cst_90 = arith.constant dense<0.000000e+00> : vector<12x12xf32>
    %157 = tpu.matmul %153, %156, %cst_90 {dimension_numbers = #tpu.dot_dimension_numbers<[1], [0], [0], [1], [0, 0, 1, 1], [], []>} : vector<12x8xf32>, vector<8x12xf32>, vector<12x12xf32> -> vector<12x12xf32>
    %cst_91 = arith.constant 0.353553385 : f32
    %158 = vector.broadcast %cst_91 : f32 to vector<12x12xf32>
    %159 = arith.mulf %157, %158 : vector<12x12xf32>
    %160 = arith.addf %159, %97 : vector<12x12xf32>
    %cst_92 = arith.constant dense<0xFF800000> : vector<12xf32>
    %161 = vector.multi_reduction <maximumf>, %160, %cst_92 [1] : vector<12x12xf32> to vector<12xf32>
    %162 = vector.shape_cast %161 : vector<12xf32> to vector<12x1xf32>
    %163 = vector.broadcast %162 : vector<12x1xf32> to vector<12x12xf32>
    %164 = arith.subf %160, %163 : vector<12x12xf32>
    %165 = math.exp %164 : vector<12x12xf32>
    %cst_93 = arith.constant dense<0.000000e+00> : vector<12xf32>
    %166 = vector.multi_reduction <add>, %165, %cst_93 [1] : vector<12x12xf32> to vector<12xf32>
    %167 = vector.shape_cast %166 : vector<12xf32> to vector<12x1xf32>
    %168 = tpu.reciprocal %167 {approx = true} : vector<12x1xf32> -> vector<12x1xf32>
    %169 = vector.broadcast %168 : vector<12x1xf32> to vector<12x12xf32>
    %170 = arith.mulf %165, %169 : vector<12x12xf32>
    %cst_94 = arith.constant dense<0.000000e+00> : vector<12x8xf32>
    %171 = tpu.matmul %170, %155, %cst_94 {dimension_numbers = #tpu.dot_dimension_numbers<[1], [0], [0], [1], [0, 0, 1, 1], [], []>} : vector<12x12xf32>, vector<12x8xf32>, vector<12x8xf32> -> vector<12x8xf32>
    %172 = vector.extract_strided_slice %110 {offsets = [8, 0], sizes = [8, 32], strides = [1, 1]} : vector<32x32xf32> to vector<8x32xf32>
    %cst_95 = arith.constant dense<0.000000e+00> : vector<12x32xf32>
    %173 = tpu.matmul %171, %172, %cst_95 {dimension_numbers = #tpu.dot_dimension_numbers<[1], [0], [0], [1], [0, 0, 1, 1], [], []>} : vector<12x8xf32>, vector<8x32xf32>, vector<12x32xf32> -> vector<12x32xf32>
    %174 = arith.addf %152, %173 : vector<12x32xf32>
    %175 = vector.extract_strided_slice %123 {offsets = [0, 16], sizes = [12, 8], strides = [1, 1]} : vector<12x32xf32> to vector<12x8xf32>
    %176 = vector.extract_strided_slice %126 {offsets = [0, 16], sizes = [12, 8], strides = [1, 1]} : vector<12x32xf32> to vector<12x8xf32>
    %177 = vector.extract_strided_slice %129 {offsets = [0, 16], sizes = [12, 8], strides = [1, 1]} : vector<12x32xf32> to vector<12x8xf32>
    %178 = tpu.transpose %176, [1, 0] : vector<12x8xf32> -> vector<8x12xf32>
    %cst_96 = arith.constant dense<0.000000e+00> : vector<12x12xf32>
    %179 = tpu.matmul %175, %178, %cst_96 {dimension_numbers = #tpu.dot_dimension_numbers<[1], [0], [0], [1], [0, 0, 1, 1], [], []>} : vector<12x8xf32>, vector<8x12xf32>, vector<12x12xf32> -> vector<12x12xf32>
    %cst_97 = arith.constant 0.353553385 : f32
    %180 = vector.broadcast %cst_97 : f32 to vector<12x12xf32>
    %181 = arith.mulf %179, %180 : vector<12x12xf32>
    %182 = arith.addf %181, %97 : vector<12x12xf32>
    %cst_98 = arith.constant dense<0xFF800000> : vector<12xf32>
    %183 = vector.multi_reduction <maximumf>, %182, %cst_98 [1] : vector<12x12xf32> to vector<12xf32>
    %184 = vector.shape_cast %183 : vector<12xf32> to vector<12x1xf32>
    %185 = vector.broadcast %184 : vector<12x1xf32> to vector<12x12xf32>
    %186 = arith.subf %182, %185 : vector<12x12xf32>
    %187 = math.exp %186 : vector<12x12xf32>
    %cst_99 = arith.constant dense<0.000000e+00> : vector<12xf32>
    %188 = vector.multi_reduction <add>, %187, %cst_99 [1] : vector<12x12xf32> to vector<12xf32>
    %189 = vector.shape_cast %188 : vector<12xf32> to vector<12x1xf32>
    %190 = tpu.reciprocal %189 {approx = true} : vector<12x1xf32> -> vector<12x1xf32>
    %191 = vector.broadcast %190 : vector<12x1xf32> to vector<12x12xf32>
    %192 = arith.mulf %187, %191 : vector<12x12xf32>
    %cst_100 = arith.constant dense<0.000000e+00> : vector<12x8xf32>
    %193 = tpu.matmul %192, %177, %cst_100 {dimension_numbers = #tpu.dot_dimension_numbers<[1], [0], [0], [1], [0, 0, 1, 1], [], []>} : vector<12x12xf32>, vector<12x8xf32>, vector<12x8xf32> -> vector<12x8xf32>
    %194 = vector.extract_strided_slice %110 {offsets = [16, 0], sizes = [8, 32], strides = [1, 1]} : vector<32x32xf32> to vector<8x32xf32>
    %cst_101 = arith.constant dense<0.000000e+00> : vector<12x32xf32>
    %195 = tpu.matmul %193, %194, %cst_101 {dimension_numbers = #tpu.dot_dimension_numbers<[1], [0], [0], [1], [0, 0, 1, 1], [], []>} : vector<12x8xf32>, vector<8x32xf32>, vector<12x32xf32> -> vector<12x32xf32>
    %196 = arith.addf %174, %195 : vector<12x32xf32>
    %197 = vector.extract_strided_slice %123 {offsets = [0, 24], sizes = [12, 8], strides = [1, 1]} : vector<12x32xf32> to vector<12x8xf32>
    %198 = vector.extract_strided_slice %126 {offsets = [0, 24], sizes = [12, 8], strides = [1, 1]} : vector<12x32xf32> to vector<12x8xf32>
    %199 = vector.extract_strided_slice %129 {offsets = [0, 24], sizes = [12, 8], strides = [1, 1]} : vector<12x32xf32> to vector<12x8xf32>
    %200 = tpu.transpose %198, [1, 0] : vector<12x8xf32> -> vector<8x12xf32>
    %cst_102 = arith.constant dense<0.000000e+00> : vector<12x12xf32>
    %201 = tpu.matmul %197, %200, %cst_102 {dimension_numbers = #tpu.dot_dimension_numbers<[1], [0], [0], [1], [0, 0, 1, 1], [], []>} : vector<12x8xf32>, vector<8x12xf32>, vector<12x12xf32> -> vector<12x12xf32>
    %cst_103 = arith.constant 0.353553385 : f32
    %202 = vector.broadcast %cst_103 : f32 to vector<12x12xf32>
    %203 = arith.mulf %201, %202 : vector<12x12xf32>
    %204 = arith.addf %203, %97 : vector<12x12xf32>
    %cst_104 = arith.constant dense<0xFF800000> : vector<12xf32>
    %205 = vector.multi_reduction <maximumf>, %204, %cst_104 [1] : vector<12x12xf32> to vector<12xf32>
    %206 = vector.shape_cast %205 : vector<12xf32> to vector<12x1xf32>
    %207 = vector.broadcast %206 : vector<12x1xf32> to vector<12x12xf32>
    %208 = arith.subf %204, %207 : vector<12x12xf32>
    %209 = math.exp %208 : vector<12x12xf32>
    %cst_105 = arith.constant dense<0.000000e+00> : vector<12xf32>
    %210 = vector.multi_reduction <add>, %209, %cst_105 [1] : vector<12x12xf32> to vector<12xf32>
    %211 = vector.shape_cast %210 : vector<12xf32> to vector<12x1xf32>
    %212 = tpu.reciprocal %211 {approx = true} : vector<12x1xf32> -> vector<12x1xf32>
    %213 = vector.broadcast %212 : vector<12x1xf32> to vector<12x12xf32>
    %214 = arith.mulf %209, %213 : vector<12x12xf32>
    %cst_106 = arith.constant dense<0.000000e+00> : vector<12x8xf32>
    %215 = tpu.matmul %214, %199, %cst_106 {dimension_numbers = #tpu.dot_dimension_numbers<[1], [0], [0], [1], [0, 0, 1, 1], [], []>} : vector<12x12xf32>, vector<12x8xf32>, vector<12x8xf32> -> vector<12x8xf32>
    %216 = vector.extract_strided_slice %110 {offsets = [24, 0], sizes = [8, 32], strides = [1, 1]} : vector<32x32xf32> to vector<8x32xf32>
    %cst_107 = arith.constant dense<0.000000e+00> : vector<12x32xf32>
    %217 = tpu.matmul %215, %216, %cst_107 {dimension_numbers = #tpu.dot_dimension_numbers<[1], [0], [0], [1], [0, 0, 1, 1], [], []>} : vector<12x8xf32>, vector<8x32xf32>, vector<12x32xf32> -> vector<12x32xf32>
    %218 = arith.addf %196, %217 : vector<12x32xf32>
    %219 = vector.broadcast %111 : vector<1x32xf32> to vector<12x32xf32>
    %220 = arith.addf %218, %219 : vector<12x32xf32>
    %c0_108 = arith.constant 0 : index
    %c0_109 = arith.constant 0 : index
    %c0_110 = arith.constant 0 : index
    %221 = vector.load %arg29[%c0_108, %c0_109, %c0_110] : memref<1x12x32xf32, #tpu.memory_space<vmem>>, vector<1x12x32xf32>
    %222 = vector.shape_cast %221 : vector<1x12x32xf32> to vector<12x32xf32>
    %223 = vector.shape_cast %220 : vector<12x32xf32> to vector<1x12x32xf32>
    tpu.vector_store %arg29[%c0_108, %c0_109, %c0_110], %223 {strides = array<i32>} : memref<1x12x32xf32, #tpu.memory_space<vmem>>, vector<1x12x32xf32>,
    return
  }
  func.func @transform_0(%arg0: i32) -> (i32, i32, i32, i32) {
    %c0_i32 = arith.constant 0 : i32
    %c0_i32_0 = arith.constant 0 : i32
    %c0_i32_1 = arith.constant 0 : i32
    %c0_i32_2 = arith.constant 0 : i32
    return %arg0, %c0_i32, %c0_i32_0, %c0_i32_1 : i32, i32, i32, i32
  }
  func.func @transform_1(%arg0: i32) -> (i32, i32) {
    %c0_i32 = arith.constant 0 : i32
    %c0_i32_0 = arith.constant 0 : i32
    %c0_i32_1 = arith.constant 0 : i32
    return %c0_i32, %c0_i32_0 : i32, i32
  }
  func.func @transform_2(%arg0: i32) -> (i32, i32) {
    %c0_i32 = arith.constant 0 : i32
    %c0_i32_0 = arith.constant 0 : i32
    %c0_i32_1 = arith.constant 0 : i32
    return %c0_i32, %c0_i32_0 : i32, i32
  }
  func.func @transform_3(%arg0: i32) -> (i32, i32) {
    %c0_i32 = arith.constant 0 : i32
    %c0_i32_0 = arith.constant 0 : i32
    %c0_i32_1 = arith.constant 0 : i32
    return %c0_i32, %c0_i32_0 : i32, i32
  }
  func.func @transform_4(%arg0: i32) -> (i32, i32) {
    %c0_i32 = arith.constant 0 : i32
    %c0_i32_0 = arith.constant 0 : i32
    %c0_i32_1 = arith.constant 0 : i32
    return %c0_i32, %c0_i32_0 : i32, i32
  }
  func.func @transform_5(%arg0: i32) -> (i32, i32) {
    %c0_i32 = arith.constant 0 : i32
    %c0_i32_0 = arith.constant 0 : i32
    %c0_i32_1 = arith.constant 0 : i32
    return %c0_i32, %c0_i32_0 : i32, i32
  }
  func.func @transform_6(%arg0: i32) -> (i32, i32) {
    %c0_i32 = arith.constant 0 : i32
    %c0_i32_0 = arith.constant 0 : i32
    %c0_i32_1 = arith.constant 0 : i32
    return %c0_i32, %c0_i32_0 : i32, i32
  }
  func.func @transform_7(%arg0: i32) -> (i32, i32) {
    %c0_i32 = arith.constant 0 : i32
    %c0_i32_0 = arith.constant 0 : i32
    %c0_i32_1 = arith.constant 0 : i32
    return %c0_i32, %c0_i32_0 : i32, i32
  }
  func.func @transform_8(%arg0: i32) -> (i32, i32) {
    %c0_i32 = arith.constant 0 : i32
    %c0_i32_0 = arith.constant 0 : i32
    %c0_i32_1 = arith.constant 0 : i32
    return %c0_i32, %c0_i32_0 : i32, i32
  }
  func.func @transform_9(%arg0: i32) -> (i32, i32) {
    %c0_i32 = arith.constant 0 : i32
    %c0_i32_0 = arith.constant 0 : i32
    %c0_i32_1 = arith.constant 0 : i32
    return %c0_i32, %c0_i32_0 : i32, i32
  }
  func.func @transform_10(%arg0: i32) -> (i32, i32) {
    %c0_i32 = arith.constant 0 : i32
    %c0_i32_0 = arith.constant 0 : i32
    %c0_i32_1 = arith.constant 0 : i32
    return %c0_i32, %c0_i32_0 : i32, i32
  }
  func.func @transform_11(%arg0: i32) -> (i32, i32) {
    %c0_i32 = arith.constant 0 : i32
    %c0_i32_0 = arith.constant 0 : i32
    %c0_i32_1 = arith.constant 0 : i32
    return %c0_i32, %c0_i32_0 : i32, i32
  }
  func.func @transform_12(%arg0: i32) -> (i32, i32) {
    %c0_i32 = arith.constant 0 : i32
    %c0_i32_0 = arith.constant 0 : i32
    %c0_i32_1 = arith.constant 0 : i32
    return %c0_i32, %c0_i32_0 : i32, i32
  }
  func.func @transform_13(%arg0: i32) -> (i32, i32) {
    %c0_i32 = arith.constant 0 : i32
    %c0_i32_0 = arith.constant 0 : i32
    %c0_i32_1 = arith.constant 0 : i32
    return %c0_i32, %c0_i32_0 : i32, i32
  }
  func.func @transform_14(%arg0: i32) -> (i32, i32) {
    %c0_i32 = arith.constant 0 : i32
    %c0_i32_0 = arith.constant 0 : i32
    %c0_i32_1 = arith.constant 0 : i32
    return %c0_i32, %c0_i32_0 : i32, i32
  }
  func.func @transform_15(%arg0: i32) -> (i32, i32) {
    %c0_i32 = arith.constant 0 : i32
    %c0_i32_0 = arith.constant 0 : i32
    %c0_i32_1 = arith.constant 0 : i32
    return %c0_i32, %c0_i32_0 : i32, i32
  }
  func.func @transform_16(%arg0: i32) -> (i32, i32) {
    %c0_i32 = arith.constant 0 : i32
    %c0_i32_0 = arith.constant 0 : i32
    %c0_i32_1 = arith.constant 0 : i32
    return %c0_i32, %c0_i32_0 : i32, i32
  }
  func.func @transform_17(%arg0: i32) -> (i32, i32) {
    %c0_i32 = arith.constant 0 : i32
    %c0_i32_0 = arith.constant 0 : i32
    %c0_i32_1 = arith.constant 0 : i32
    return %c0_i32, %c0_i32_0 : i32, i32
  }
  func.func @transform_18(%arg0: i32) -> (i32, i32) {
    %c0_i32 = arith.constant 0 : i32
    %c0_i32_0 = arith.constant 0 : i32
    %c0_i32_1 = arith.constant 0 : i32
    return %c0_i32, %c0_i32_0 : i32, i32
  }
  func.func @transform_19(%arg0: i32) -> (i32, i32) {
    %c0_i32 = arith.constant 0 : i32
    %c0_i32_0 = arith.constant 0 : i32
    %c0_i32_1 = arith.constant 0 : i32
    return %c0_i32, %c0_i32_0 : i32, i32
  }
  func.func @transform_20(%arg0: i32) -> (i32, i32) {
    %c0_i32 = arith.constant 0 : i32
    %c0_i32_0 = arith.constant 0 : i32
    %c0_i32_1 = arith.constant 0 : i32
    return %c0_i32, %c0_i32_0 : i32, i32
  }
  func.func @transform_21(%arg0: i32) -> (i32, i32) {
    %c0_i32 = arith.constant 0 : i32
    %c0_i32_0 = arith.constant 0 : i32
    %c0_i32_1 = arith.constant 0 : i32
    return %c0_i32, %c0_i32_0 : i32, i32
  }
  func.func @transform_22(%arg0: i32) -> (i32, i32) {
    %c0_i32 = arith.constant 0 : i32
    %c0_i32_0 = arith.constant 0 : i32
    %c0_i32_1 = arith.constant 0 : i32
    return %c0_i32, %c0_i32_0 : i32, i32
  }
  func.func @transform_23(%arg0: i32) -> (i32, i32) {
    %c0_i32 = arith.constant 0 : i32
    %c0_i32_0 = arith.constant 0 : i32
    %c0_i32_1 = arith.constant 0 : i32
    return %c0_i32, %c0_i32_0 : i32, i32
  }
  func.func @transform_24(%arg0: i32) -> (i32, i32) {
    %c0_i32 = arith.constant 0 : i32
    %c0_i32_0 = arith.constant 0 : i32
    %c0_i32_1 = arith.constant 0 : i32
    return %c0_i32, %c0_i32_0 : i32, i32
  }
  func.func @transform_25(%arg0: i32) -> (i32, i32) {
    %c0_i32 = arith.constant 0 : i32
    %c0_i32_0 = arith.constant 0 : i32
    %c0_i32_1 = arith.constant 0 : i32
    return %c0_i32, %c0_i32_0 : i32, i32
  }
  func.func @transform_26(%arg0: i32) -> (i32, i32) {
    %c0_i32 = arith.constant 0 : i32
    %c0_i32_0 = arith.constant 0 : i32
    %c0_i32_1 = arith.constant 0 : i32
    return %c0_i32, %c0_i32_0 : i32, i32
  }
  func.func @transform_27(%arg0: i32) -> (i32, i32) {
    %c0_i32 = arith.constant 0 : i32
    %c0_i32_0 = arith.constant 0 : i32
    %c0_i32_1 = arith.constant 0 : i32
    return %c0_i32, %c0_i32_0 : i32, i32
  }
  func.func @transform_28(%arg0: i32) -> (i32, i32, i32) {
    %c0_i32 = arith.constant 0 : i32
    %c0_i32_0 = arith.constant 0 : i32
    %c0_i32_1 = arith.constant 0 : i32
    return %arg0, %c0_i32, %c0_i32_0 : i32, i32, i32
  }
}

</mosaic_0001>

<bundles_post_ra>
// kernel: vectornet_forward.1
= control target key start
LH: loop header
LB: loop body
LE: loop exit
PB: predicated region body
PF: predicated region fallthrough
CT: control target
= control target key end

     0   :  { %s6050_s0 = inlined_call_operand.vmem [shape: f32[2,12,8,8], index: 0, kind: input, shape index: {}]   ;;  %s6051_s1 = inlined_call_operand.vmem [shape: f32[12,12], index: 1, kind: input, shape index: {}]   ;;  %s6052_s2 = inlined_call_operand.vmem [shape: f32[8,8], index: 2, kind: input, shape index: {}]   ;;  %s6053_s3 = inlined_call_operand.vmem [shape: f32[1,8], index: 3, kind: input, shape index: {}]   ;;  %s6054_s4 = inlined_call_operand.vmem [shape: f32[1,8], index: 4, kind: input, shape index: {}]   ;;  %s6055_s5 = inlined_call_operand.vmem [shape: f32[1,8], index: 5, kind: input, shape index: {}]   ;;  %s6056_s6 = inlined_call_operand.vmem [shape: f32[16,16], index: 6, kind: input, shape index: {}]   ;;  %s6057_s7 = inlined_call_operand.vmem [shape: f32[1,16], index: 7, kind: input, shape index: {}]   ;;  %s6058_s8 = inlined_call_operand.vmem [shape: f32[16,16], index: 8, kind: input, shape index: {}]   ;;  %s6059_s9 = inlined_call_operand.vmem [shape: f32[1,16], index: 9, kind: input, shape index: {}]   ;;  %s6060_s10 = inlined_call_operand.vmem [shape: f32[1,16], index: 10, kind: input, shape index: {}]   ;;  %s6061_s11 = inlined_call_operand.vmem [shape: f32[1,16], index: 11, kind: input, shape index: {}]   ;;  %s6062_s12 = inlined_call_operand.vmem [shape: f32[32,32], index: 12, kind: input, shape index: {}]   ;;  %s6063_s13 = inlined_call_operand.vmem [shape: f32[1,32], index: 13, kind: input, shape index: {}]   ;;  %s6064_s14 = inlined_call_operand.vmem [shape: f32[32,32], index: 14, kind: input, shape index: {}]   ;;  %s6065_s15 = inlined_call_operand.vmem [shape: f32[1,32], index: 15, kind: input, shape index: {}]   ;;  %s6066_s16 = inlined_call_operand.vmem [shape: f32[32,32], index: 16, kind: input, shape index: {}]   ;;  %s6067_s17 = inlined_call_operand.vmem [shape: f32[1,32], index: 17, kind: input, shape index: {}]   ;;  %s6068_s18 = inlined_call_operand.vmem [shape: f32[32,32], index: 18, kind: input, shape index: {}]   ;;  %s6069_s19 = inlined_call_operand.vmem [shape: f32[1,32], index: 19, kind: input, shape index: {}]   ;;  %s6070_s20 = inlined_call_operand.vmem [shape: f32[32,32], index: 20, kind: input, shape index: {}]   ;;  %s6071_s21 = inlined_call_operand.vmem [shape: f32[1,32], index: 21, kind: input, shape index: {}]   ;;  %s6072_s22 = inlined_call_operand.vmem [shape: f32[32,32], index: 22, kind: input, shape index: {}]   ;;  %s6073_s23 = inlined_call_operand.vmem [shape: f32[1,32], index: 23, kind: input, shape index: {}]   ;;  %s6074_s24 = inlined_call_operand.vmem [shape: f32[32,32], index: 24, kind: input, shape index: {}]   ;;  %s6075_s25 = inlined_call_operand.vmem [shape: f32[1,32], index: 25, kind: input, shape index: {}]   ;;  %s6076_s26 = inlined_call_operand.vmem [shape: f32[32,32], index: 26, kind: input, shape index: {}]   ;;  %s6077_s27 = inlined_call_operand.vmem [shape: f32[1,32], index: 27, kind: input, shape index: {}]   ;;  %s6078_s28 = inlined_call_operand.vmem [shape: f32[2,12,32], index: 28, kind: output, shape index: {}]  }
   0x1   :  { %6083 = sst [smem:[#allocation2_spill]] %s6050_s0 }
   0x2   :  { %6084 = sst [smem:[#allocation3_spill]] %s6051_s1 }
   0x3   :  { %6085 = sst [smem:[#allocation4_spill]] %s6052_s2 }
   0x4   :  { %6086 = sst [smem:[#allocation5_spill]] %s6053_s3 }
   0x5   :  { %6087 = sst [smem:[#allocation6_spill]] %s6054_s4 }
   0x6   :  { %6088 = sst [smem:[#allocation7_spill]] %s6055_s5 }
   0x7   :  { %6089 = sst [smem:[#allocation8_spill]] %s6056_s6 }
   0x8   :  { %6090 = sst [smem:[#allocation9_spill]] %s6057_s7 }
   0x9   :  { %6091 = sst [smem:[#allocation10_spill]] %s6058_s8  ;;  %s5243_s8 = smov 0  }
   0xa   :  { %6092 = sst [smem:[#allocation11_spill]] %s6059_s9 }
   0xb   :  { %6093 = sst [smem:[#allocation12_spill]] %s6060_s10 }
   0xc   :  { %6094 = sst [smem:[#allocation13_spill]] %s6061_s11 }
   0xd   :  { %6095 = sst [smem:[#allocation14_spill]] %s6062_s12 }
   0xe LB: > { %s4488_s5 = sadd.s32 4294967295, %s5092_s8   ;;  %p4492_p0 = scmp.ge.s32.totalorder %s5092_s8, 1  ;;  %s5092_s8 = sphi %s5243_s8, %s38_s8  }
   0xf   : > { %p762_p1 = scmp.lt.s32.totalorder %s5092_s8, 3 }
  0x11   : > { %p763_p2 = pnand %p4492_p0, %p762_p1 }
  0x12   : > { %s6096_s3 = sld [smem:[#allocation4_spill]] (!%p763_p2)  ;;  %p836_p3 = scmp.lt.s32.totalorder (!%p763_p2), %s4488_s5, 1 }
  0x13   : > { %766 = sbr.rel (%p763_p2) target bundleno = 3924 (0xf54), region = 132  ;;  %s6097_s11 = sld [smem:[#allocation2_spill]] (!%p763_p2) }
  0x14   : > { %s6098_s12 = sld [smem:[#allocation5_spill]] (!%p763_p2)  ;;  %s5096_s4 = smov (!%p763_p2), 112  }
  0x15   : > { %s6099_s9 = sld [smem:[#allocation8_spill]] (!%p763_p2) }
  0x16   : > { %s6100_s0 = sld [smem:[#allocation6_spill]] (!%p763_p2) }
  0x17   : > { %s6101_s2 = sld [smem:[#allocation7_spill]] (!%p763_p2) }
  0x18   : > { %v858_v0 = vld [vmem:[%s6096_s3] sm:$0xff]  ;;  %s6110_s5 = smov (!%p836_p3, %s4488_s5), 1  ;;  %vm871_vm0 = vcmask 64512   ;;  %vm1501_vm1 = vcmask 1041409   ;;  %vm1503_vm2 = vcmask 1042434   ;;  %vm1505_vm3 = vcmask 1043459  }
  0x19   : > { %4755 = vmatprep.subr.mxu0 %v858_v0  ;;  %s4993_s6 = smul.u32 96, %s6110_s5  ;;  %vm1507_vm4 = vcmask 1044484   ;;  %vm1509_vm5 = vcmask 1045509   ;;  %vm1511_vm6 = vcmask 1046534   ;;  %vm1513_vm7 = vcmask 1047559   ;;  %s6102_s1 = sld [smem:[#allocation10_spill]] }
  0x1a   : > { %4756 = vmatpush3.msra.mxu0 %v858_v0  ;;  %v4496_v13 = vld [vmem:[%s6098_s12] ss:$0 sm:$0xff]  ;;  %s6103_s10 = sld [smem:[#allocation9_spill]]  ;;  %vm1760_vm8 = vcmask 130048   ;;  %vm2626_vm9 = vcmask 261120   ;;  %s5095_s3 = smov 120  }
  0x1b   : > { %s840_s29 = scalar_lea.vmem %s6097_s11, %s4993_s6  ;;  %s6105_s12 = sld [smem:[#allocation14_spill]]  ;;  %vm3399_vm10 = vcmask 1043456   ;;  %vm3373_vm11 = vcmask 93184   ;;  %vm3369_vm12 = vcmask 97280   ;;  %vm4431_vm13 = vcmask 257024  }
  0x1c   : > { %v846_v1 = vld [vmem:[%s840_s29] sm:$0xff]  ;;  %v847_v2 = vld [vmem:[%s840_s29 + $0x8] sm:$0xff]  ;;  %v848_v3 = vld [vmem:[%s840_s29 + $0x10] sm:$0xff]  ;;  %s6107_s30 = sld [smem:[#allocation13_spill]] }
  0x1d   : > { %4757 = vmatprep.mubr.msk.f32.mxu0 %vm871_vm0, %v846_v1  ;;  %v849_v4 = vld [vmem:[%s840_s29 + $0x18] sm:$0xff]  ;;  %v850_v5 = vld [vmem:[%s840_s29 + $0x20] sm:$0xff]  ;;  %v851_v6 = vld [vmem:[%s840_s29 + $0x28] sm:$0xff] }
  0x1e   : > { %4758 = vmatmul.mubr.msk.f32.vlgmr.msra.gmra.mxu0 %vm871_vm0, %v847_v2  ;;  %v852_v7 = vld [vmem:[%s840_s29 + $0x30] sm:$0xff]  ;;  %v853_v8 = vld [vmem:[%s840_s29 + $0x38] sm:$0xff]  ;;  %v854_v9 = vld [vmem:[%s840_s29 + $0x40] sm:$0xff] }
  0x1f   : > { %4760 = vmatprep.mubr.msk.f32.mxu0 %vm871_vm0, %v848_v3  ;;  %v855_v10 = vld [vmem:[%s840_s29 + $0x48] sm:$0xff]  ;;  %v856_v11 = vld [vmem:[%s840_s29 + $0x50] sm:$0xff]  ;;  %v857_v12 = vld [vmem:[%s840_s29 + $0x58] sm:$0xff]  ;;  %s6104_s29 = sld [smem:[#allocation11_spill]] }
  0x22   : > { %4761 = vmatmul.mubr.msk.f32.gmra.mxu0 %vm871_vm0, %v849_v4 }
  0x23   : > { %4763 = vmatprep.mubr.msk.f32.mxu0 %vm871_vm0, %v850_v5 }
  0x26   : > { %4764 = vmatmul.mubr.msk.f32.gmra.mxu0 %vm871_vm0, %v851_v6 }
  0x27   : > { %4766 = vmatprep.mubr.msk.f32.mxu0 %vm871_vm0, %v852_v7 }
  0x2a   : > { %4767 = vmatmul.mubr.msk.f32.gmra.mxu0 %vm871_vm0, %v853_v8 }
  0x2b   : > { %4769 = vmatprep.mubr.msk.f32.mxu0 %vm871_vm0, %v854_v9 }
  0x2e   : > { %4770 = vmatmul.mubr.msk.f32.gmra.mxu0 %vm871_vm0, %v855_v10 }
  0x2f   : > { %4772 = vmatprep.mubr.msk.f32.mxu0 %vm871_vm0, %v856_v11 }
  0x32   : > { %4773 = vmatmul.mubr.msk.f32.gmra.mxu0 %vm871_vm0, %v857_v12 }
  0xde   : > { %v4759_v14 = vpop.f32.mrf.mxu0 }
  0xdf   : > { %v980_v15 = vadd.f32 %v4759_v14, %v4496_v13 }
  0xe0   : > { %v974_v16 = vpop.f32.mrf.mxu0 }
  0xe1   : > { %v975_v17 = vadd.f32 %v4496_v13, %v974_v16  ;;  %v1036_v18 = vsel %vm871_vm0, %v980_v15, 0.0 }
  0xe2   : > { %1037 = vadd.xlane.f32.xlu0 %v1036_v18  ;;  %v4762_v19 = vpop.f32.mrf.mxu0 }
  0xe3   : > { %v990_v20 = vadd.f32 %v4762_v19, %v4496_v13  ;;  %v1033_v24 = vsel %vm871_vm0, %v975_v17, 0.0 }
  0xe4   : > { %v984_v21 = vpop.f32.mrf.mxu0 }
  0xe5   : > { %v985_v22 = vadd.f32 %v4496_v13, %v984_v21  ;;  %v1042_v23 = vsel %vm871_vm0, %v990_v20, 0.0 }
  0xe6   : > { %1043 = vadd.xlane.f32.xlu1 %v1042_v23  ;;  %v4765_v25 = vpop.f32.mrf.mxu0  ;;  %1034 = vadd.xlane.f32.xlu0 %v1033_v24 }
  0xe7   : > { %v1000_v27 = vadd.f32 %v4765_v25, %v4496_v13  ;;  %v1039_v29 = vsel %vm871_vm0, %v985_v22, 0.0 }
  0xe8   : > { %v994_v26 = vpop.f32.mrf.mxu0 }
  0xe9   : > { %v995_v28 = vadd.f32 %v4496_v13, %v994_v26  ;;  %v1048_v35 = vsel %vm871_vm0, %v1000_v27, 0.0 }
  0xea   : > { %v4768_v30 = vpop.f32.mrf.mxu0  ;;  %1040 = vadd.xlane.f32.xlu1 %v1039_v29 }
  0xeb   : > { %v1045_v31 = vsel %vm871_vm0, %v995_v28, 0.0  ;;  %v5280_v33 = vadd.f32 %v4768_v30, %v4496_v13 }
  0xec   : > { %v1004_v32 = vpop.f32.mrf.mxu0  ;;  %1046 = vadd.xlane.f32.xlu0 %v1045_v31 }
  0xed   : > { %v1005_v34 = vadd.f32 %v4496_v13, %v1004_v32  ;;  %v1054_v41 = vsel %vm871_vm0, %v5280_v33, 0.0 }
  0xee   : > { %v4771_v36 = vpop.f32.mrf.mxu0  ;;  %1049 = vadd.xlane.f32.xlu1 %v1048_v35 }
  0xef   : > { %v5283_v37 = vadd.f32 %v4771_v36, %v4496_v13  ;;  %v1051_v38 = vsel %vm871_vm0, %v1005_v34, 0.0 }
  0xf0   : > { %v1014_v39 = vpop.f32.mrf.mxu0  ;;  %1052 = vadd.xlane.f32.xlu0 %v1051_v38 }
  0xf1   : > { %v5286_v40 = vadd.f32 %v4496_v13, %v1014_v39  ;;  %v1060_v42 = vsel %vm871_vm0, %v5283_v37, 0.0 }
  0xf2   : > { %v4774_v43 = vpop.f32.mrf.mxu0  ;;  %1055 = vadd.xlane.f32.xlu1 %v1054_v41 }
  0xf3   : > { %v5292_v45 = vadd.f32 %v4774_v43, %v4496_v13  ;;  %v1057_v47 = vsel %vm871_vm0, %v5286_v40, 0.0 }
  0xf4   : > { %v1024_v44 = vpop.f32.mrf.mxu0  ;;  %1061 = vadd.xlane.f32.xlu0 %v1060_v42 }
  0xf5   : > { %v5294_v46 = vadd.f32 %v4496_v13, %v1024_v44  ;;  %v1066_v49 = vsel %vm871_vm0, %v5292_v45, 0.0 }
  0xf6   : > { %1058 = vadd.xlane.f32.xlu1 %v1057_v47  ;;  %v863_v47 = vld [vmem:[%s6099_s9 + $0x8] sm:$0xff] }
  0xf7   : > { %v1063_v48 = vsel %vm871_vm0, %v5294_v46, 0.0  ;;  %4795 = vmatprep.subr.mxu0 %v863_v47 }
  0xf8   : > { %1064 = vadd.xlane.f32.xlu0 %v1063_v48  ;;  %4796 = vmatpush3.msra.mxu0 %v863_v47 }
  0xfa   : > { %1067 = vadd.xlane.f32.xlu1 %v1066_v49 }
 0x16b   : > { %v1038_v50 = vpop.xlane.xlu0 %1037 }
 0x16c   : > { %v1071_v51 = vmul.f32 0.125, %v1038_v50 }
 0x16e   : > { %v5302_v52 = vsub.f32 %v980_v15, %v1071_v51 }
 0x16f   : > { %v1044_v53 = vpop.xlane.xlu1 %1043  ;;  %v1035_v54 = vpop.xlane.xlu0 %1034 }
 0x170   : > { %v1073_v55 = vmul.f32 0.125, %v1044_v53  ;;  %v1070_v56 = vmul.f32 0.125, %v1035_v54  ;;  %v1095_v57 = vmul.f32 %v5302_v52, %v5302_v52 }
 0x172   : > { %v5306_v58 = vsub.f32 %v990_v20, %v1073_v55  ;;  %v5308_v59 = vsub.f32 %v975_v17, %v1070_v56  ;;  %v1109_v60 = vsel %vm871_vm0, %v1095_v57, 0.0 }
 0x173   : > { %1110 = vadd.xlane.f32.xlu1 %v1109_v60  ;;  %v1041_v61 = vpop.xlane.xlu1 %1040 }
 0x174   : > { %v1072_v62 = vmul.f32 0.125, %v1041_v61  ;;  %v1097_v63 = vmul.f32 %v5306_v58, %v5306_v58  ;;  %v1094_v0 = vmul.f32 %v5308_v59, %v5308_v59 }
 0x175   : > { %v1047_v1 = vpop.xlane.xlu0 %1046 }
 0x176   : > { %v5315_v2 = vsub.f32 %v985_v22, %v1072_v62  ;;  %v1074_v3 = vmul.f32 0.125, %v1047_v1  ;;  %v1115_v4 = vsel %vm871_vm0, %v1097_v63, 0.0  ;;  %v1106_v5 = vsel %vm871_vm0, %v1094_v0, 0.0 }
 0x177   : > { %1116 = vadd.xlane.f32.xlu1 %v1115_v4  ;;  %v1050_v6 = vpop.xlane.xlu1 %1049  ;;  %1107 = vadd.xlane.f32.xlu0 %v1106_v5 }
 0x178   : > { %v5319_v7 = vsub.f32 %v995_v28, %v1074_v3  ;;  %v1075_v8 = vmul.f32 0.125, %v1050_v6  ;;  %v1096_v9 = vmul.f32 %v5315_v2, %v5315_v2 }
 0x179   : > { %v1053_v10 = vpop.xlane.xlu0 %1052 }
 0x17a   : > { %v5323_v11 = vsub.f32 %v1000_v27, %v1075_v8  ;;  %v1076_v12 = vmul.f32 0.125, %v1053_v10  ;;  %v1112_v13 = vsel %vm871_vm0, %v1096_v9, 0.0  ;;  %v1098_v14 = vmul.f32 %v5319_v7, %v5319_v7 }
 0x17b   : > { %v1056_v15 = vpop.xlane.xlu1 %1055  ;;  %1113 = vadd.xlane.f32.xlu0 %v1112_v13  ;;  %v5376_v13 = vld [vmem:[%s6100_s0] ss:$0 sm:$0xff] }
 0x17c   : > { %v5328_v16 = vsub.f32 %v1005_v34, %v1076_v12  ;;  %v1077_v17 = vmul.f32 0.125, %v1056_v15  ;;  %v1099_v18 = vmul.f32 %v5323_v11, %v5323_v11  ;;  %v1118_v20 = vsel %vm871_vm0, %v1098_v14, 0.0 }
 0x17d   : > { %v1062_v19 = vpop.xlane.xlu0 %1061 }
 0x17e   : > { %v5334_v21 = vsub.f32 %v5280_v33, %v1077_v17  ;;  %v1079_v22 = vmul.f32 0.125, %v1062_v19  ;;  %v1121_v23 = vsel %vm871_vm0, %v1099_v18, 0.0  ;;  %v1100_v24 = vmul.f32 %v5328_v16, %v5328_v16 }
 0x17f   : > { %1122 = vadd.xlane.f32.xlu1 %v1121_v23  ;;  %v1059_v25 = vpop.xlane.xlu1 %1058  ;;  %1119 = vadd.xlane.f32.xlu0 %v1118_v20  ;;  %v5382_v20 = vld [vmem:[%s6101_s2] ss:$0 sm:$0xff]  ;;  %s6106_s2 = sld [smem:[#allocation12_spill]] }
 0x180   : > { %v5340_v26 = vsub.f32 %v5283_v37, %v1079_v22  ;;  %v1078_v27 = vmul.f32 0.125, %v1059_v25  ;;  %v1101_v28 = vmul.f32 %v5334_v21, %v5334_v21  ;;  %v1124_v30 = vsel %vm871_vm0, %v1100_v24, 0.0 }
 0x181   : > { %v1065_v29 = vpop.xlane.xlu0 %1064 }
 0x182   : > { %v5346_v31 = vsub.f32 %v5286_v40, %v1078_v27  ;;  %v1080_v32 = vmul.f32 0.125, %v1065_v29  ;;  %v1127_v33 = vsel %vm871_vm0, %v1101_v28, 0.0  ;;  %v1103_v34 = vmul.f32 %v5340_v26, %v5340_v26 }
 0x183   : > { %1128 = vadd.xlane.f32.xlu1 %v1127_v33  ;;  %v1068_v35 = vpop.xlane.xlu1 %1067  ;;  %1125 = vadd.xlane.f32.xlu0 %v1124_v30 }
 0x184   : > { %v5352_v36 = vsub.f32 %v5294_v46, %v1080_v32  ;;  %v1081_v37 = vmul.f32 0.125, %v1068_v35  ;;  %v1102_v38 = vmul.f32 %v5346_v31, %v5346_v31  ;;  %v1133_v41 = vsel %vm871_vm0, %v1103_v34, 0.0 }
 0x186   : > { %v5357_v39 = vsub.f32 %v5292_v45, %v1081_v37  ;;  %v1130_v40 = vsel %vm871_vm0, %v1102_v38, 0.0  ;;  %v1104_v42 = vmul.f32 %v5352_v36, %v5352_v36  ;;  %v862_v45 = vld [vmem:[%s6099_s9] sm:$0xff] }
 0x187   : > { %1131 = vadd.xlane.f32.xlu1 %v1130_v40  ;;  %1134 = vadd.xlane.f32.xlu0 %v1133_v41 }
 0x188   : > { %v1105_v43 = vmul.f32 %v5357_v39, %v5357_v39  ;;  %v1136_v46 = vsel %vm871_vm0, %v1104_v42, 0.0  ;;  %4775 = vmatprep.subr.mxu1 %v862_v45 }
 0x189   : > { %4776 = vmatpush3.msra.mxu1 %v862_v45 }
 0x18a   : > { %v1139_v44 = vsel %vm871_vm0, %v1105_v43, 0.0 }
 0x18b   : > { %1140 = vadd.xlane.f32.xlu1 %v1139_v44  ;;  %1137 = vadd.xlane.f32.xlu0 %v1136_v46 }
 0x1fc   : > { %v1111_v48 = vpop.xlane.xlu1 %1110 }
 0x1fd   : > { %v1143_v49 = vmul.f32 0.125, %v1111_v48 }
 0x1ff   : > { %v1155_v50 = vadd.f32 1e-05, %v1143_v49 }
 0x200   : > { %v1117_v51 = vpop.xlane.xlu1 %1116  ;;  %v1108_v53 = vpop.xlane.xlu0 %1107 }
 0x201   : > { %5006 = vrsqrt.f32 %v1155_v50  ;;  %v1145_v54 = vmul.f32 0.125, %v1117_v51  ;;  %v1142_v55 = vmul.f32 0.125, %v1108_v53 }
 0x203   : > { %v1157_v56 = vadd.f32 1e-05, %v1145_v54  ;;  %v1154_v57 = vadd.f32 1e-05, %v1142_v55 }
 0x204   : > { %v1114_v60 = vpop.xlane.xlu0 %1113 }
 0x205   : > { %5008 = vrsqrt.f32 %v1157_v56  ;;  %v1144_v61 = vmul.f32 0.125, %v1114_v60 }
 0x206   : > { %5010 = vrsqrt.f32 %v1154_v57 }
 0x207   : > { %v1156_v62 = vadd.f32 1e-05, %v1144_v61 }
 0x208   : > { %v1123_v63 = vpop.xlane.xlu1 %1122  ;;  %v1120_v0 = vpop.xlane.xlu0 %1119 }
 0x209   : > { %5012 = vrsqrt.f32 %v1156_v62  ;;  %v1147_v1 = vmul.f32 0.125, %v1123_v63  ;;  %v1146_v3 = vmul.f32 0.125, %v1120_v0 }
 0x20b   : > { %v1159_v4 = vadd.f32 1e-05, %v1147_v1  ;;  %v1158_v5 = vadd.f32 1e-05, %v1146_v3 }
 0x20c   : > { %v1129_v6 = vpop.xlane.xlu1 %1128  ;;  %v1126_v8 = vpop.xlane.xlu0 %1125 }
 0x20d   : > { %5014 = vrsqrt.f32 %v1159_v4  ;;  %v1149_v9 = vmul.f32 0.125, %v1129_v6  ;;  %v1148_v10 = vmul.f32 0.125, %v1126_v8 }
 0x20e   : > { %v5007_v12 = vpop.eup %5006  ;;  %5016 = vrsqrt.f32 %v1158_v5 }
 0x20f   : > { %v1161_v14 = vadd.f32 1e-05, %v1149_v9  ;;  %v1160_v15 = vadd.f32 1e-05, %v1148_v10  ;;  %v1179_v17 = vmul.f32 %v5007_v12, %v5302_v52 }
 0x210   : > { %v1132_v18 = vpop.xlane.xlu1 %1131  ;;  %v1135_v19 = vpop.xlane.xlu0 %1134 }
 0x211   : > { %5018 = vrsqrt.f32 %v1161_v14  ;;  %v1150_v22 = vmul.f32 0.125, %v1132_v18  ;;  %v1151_v23 = vmul.f32 0.125, %v1135_v19  ;;  %v1197_v24 = vmul.f32 %v5376_v13, %v1179_v17 }
 0x212   : > { %v5009_v25 = vpop.eup %5008  ;;  %5020 = vrsqrt.f32 %v1160_v15 }
 0x213   : > { %v5011_v27 = vpop.eup %5010  ;;  %v1162_v28 = vadd.f32 1e-05, %v1150_v22  ;;  %v1215_v29 = vadd.f32 %v5382_v20, %v1197_v24  ;;  %v1181_v52 = vmul.f32 %v5009_v25, %v5306_v58  ;;  %v1163_v34 = vadd.f32 1e-05, %v1151_v23 }
 0x214   : > { %v1141_v30 = vpop.xlane.xlu1 %1140  ;;  %v1138_v32 = vpop.xlane.xlu0 %1137  ;;  %v1178_v33 = vmul.f32 %v5011_v27, %v5308_v59 }
 0x215   : > { %v1153_v35 = vmul.f32 0.125, %v1141_v30  ;;  %v1152_v37 = vmul.f32 0.125, %v1138_v32  ;;  %v1227_v38 = vmax.f32 %v1215_v29, 0.0  ;;  %5022 = vrsqrt.f32 %v1162_v28 }
 0x216   : > { %v5013_v40 = vpop.eup %5012  ;;  %v1196_v41 = vmul.f32 %v5376_v13, %v1178_v33  ;;  %v1199_v42 = vmul.f32 %v5376_v13, %v1181_v52  ;;  %5024 = vrsqrt.f32 %v1163_v34 }
 0x217   : > { %v1165_v43 = vadd.f32 1e-05, %v1153_v35  ;;  %v1164_v44 = vadd.f32 1e-05, %v1152_v37  ;;  %v1245_v46 = vsel %vm871_vm0, %v1227_v38, -inf  ;;  %v1180_v58 = vmul.f32 %v5013_v40, %v5315_v2 }
 0x218   : > { %v1214_v45 = vadd.f32 %v5382_v20, %v1196_v41  ;;  %v1246_v47 = vrot.slane %v1245_v46, 4  ;;  %v1217_v59 = vadd.f32 %v5382_v20, %v1199_v42 }
 0x219   : > { %v1198_v48 = vmul.f32 %v5376_v13, %v1180_v58  ;;  %5026 = vrsqrt.f32 %v1165_v43 }
 0x21a   : > { %v5015_v49 = vpop.eup %5014  ;;  %v1226_v50 = vmax.f32 %v1214_v45, 0.0  ;;  %v1247_v51 = vmax.f32 %v1245_v46, %v1246_v47  ;;  %v1229_v53 = vmax.f32 %v1217_v59, 0.0  ;;  %5028 = vrsqrt.f32 %v1164_v44 }
 0x21b   : > { %v5017_v54 = vpop.eup %5016  ;;  %v1216_v55 = vadd.f32 %v5382_v20, %v1198_v48  ;;  %v1183_v56 = vmul.f32 %v5015_v49, %v5323_v11 }
 0x21c   : > { %v1238_v2 = vsel %vm871_vm0, %v1226_v50, -inf  ;;  %4777 = vmatprep.mubr.msk.f32.mxu1 %vm871_vm0, %v1226_v50  ;;  %v1248_v57 = vrot.slane %v1247_v51, 2  ;;  %v1259_v60 = vsel %vm871_vm0, %v1229_v53, -inf  ;;  %v1182_v61 = vmul.f32 %v5017_v54, %v5319_v7 }
 0x21d   : > { %v1239_v62 = vrot.slane %v1238_v2, 4  ;;  %4778 = vmatmul.mubr.msk.f32.vlgmr.msra.gmra.mxu1 %vm871_vm0, %v1227_v38  ;;  %v1228_v63 = vmax.f32 %v1216_v55, 0.0  ;;  %v1260_v0 = vrot.slane %v1259_v60, 4  ;;  %v1201_v1 = vmul.f32 %v5376_v13, %v1183_v56 }
 0x21e   : > { %v5019_v3 = vpop.eup %5018  ;;  %v1249_v4 = vmax.f32 %v1247_v51, %v1248_v57  ;;  %v1200_v11 = vmul.f32 %v5376_v13, %v1182_v61 }
 0x21f   : > { %v5021_v5 = vpop.eup %5020  ;;  %v1240_v6 = vmax.f32 %v1238_v2, %v1239_v62  ;;  %v1252_v8 = vsel %vm871_vm0, %v1228_v63, -inf  ;;  %4780 = vmatprep.mubr.msk.f32.mxu1 %vm871_vm0, %v1228_v63  ;;  %v1261_v9 = vmax.f32 %v1259_v60, %v1260_v0  ;;  %v1219_v7 = vadd.f32 %v5382_v20, %v1201_v1 }
 0x220   : > { %v1250_v10 = vrot.slane %v1249_v4, 1  ;;  %v1253_v12 = vrot.slane %v1252_v8, 4  ;;  %v1218_v14 = vadd.f32 %v5382_v20, %v1200_v11  ;;  %v1184_v15 = vmul.f32 %v5021_v5, %v5328_v16 }
 0x221   : > { %v1241_v17 = vrot.slane %v1240_v6, 2  ;;  %v1262_v18 = vrot.slane %v1261_v9, 2  ;;  %4781 = vmatmul.mubr.msk.f32.gmra.mxu1 %vm871_vm0, %v1229_v53  ;;  %v1231_v19 = vmax.f32 %v1219_v7, 0.0  ;;  %v1185_v22 = vmul.f32 %v5019_v3, %v5334_v21 }
 0x222   : > { %v5411_v23 = vmax.f32 %v1249_v4, %v1250_v10  ;;  %v1254_v24 = vmax.f32 %v1252_v8, %v1253_v12  ;;  %v1230_v25 = vmax.f32 %v1218_v14, 0.0  ;;  %v1202_v27 = vmul.f32 %v5376_v13, %v1184_v15  ;;  %v5023_v28 = vpop.eup %5022 }
 0x223   : > { %v1242_v29 = vmax.f32 %v1240_v6, %v1241_v17  ;;  %v1263_v52 = vmax.f32 %v1261_v9, %v1262_v18  ;;  %v1273_v30 = vsel %vm871_vm0, %v1231_v19, -inf  ;;  %v1203_v16 = vmul.f32 %v5376_v13, %v1185_v22  ;;  %v5025_v41 = vpop.eup %5024 }
 0x224   : > { %v1255_v32 = vrot.slane %v1254_v24, 2  ;;  %v1266_v33 = vsel %vm871_vm0, %v1230_v25, -inf  ;;  %4783 = vmatprep.mubr.msk.f32.mxu1 %vm871_vm0, %v1230_v25  ;;  %v1274_v34 = vrot.slane %v1273_v30, 4  ;;  %v1220_v21 = vadd.f32 %v5382_v20, %v1202_v27 }
 0x225   : > { %v1243_v35 = vrot.slane %v1242_v29, 1  ;;  %v1264_v37 = vrot.slane %v1263_v52, 1  ;;  %v1267_v38 = vrot.slane %v1266_v33, 4  ;;  %4784 = vmatmul.mubr.msk.f32.gmra.mxu1 %vm871_vm0, %v1231_v19  ;;  %v1221_v40 = vadd.f32 %v5382_v20, %v1203_v16 }
 0x226   : > { %v1256_v42 = vmax.f32 %v1254_v24, %v1255_v32  ;;  %v1275_v43 = vmax.f32 %v1273_v30, %v1274_v34  ;;  %v1232_v44 = vmax.f32 %v1220_v21, 0.0  ;;  %v1186_v46 = vmul.f32 %v5023_v28, %v5346_v31  ;;  %v5027_v58 = vpop.eup %5026 }
 0x227   : > { %v1244_v45 = vmax.f32 %v1242_v29, %v1243_v35  ;;  %v1265_v47 = vmax.f32 %v1263_v52, %v1264_v37  ;;  %v1268_v59 = vmax.f32 %v1266_v33, %v1267_v38  ;;  %v1233_v48 = vmax.f32 %v1221_v40, 0.0  ;;  %v5029_v49 = vpop.eup %5028 }
 0x228   : > { %v1257_v50 = vrot.slane %v1256_v42, 1  ;;  %v1276_v51 = vrot.slane %v1275_v43, 2  ;;  %v1280_v53 = vsel %vm871_vm0, %v1232_v44, -inf  ;;  %4786 = vmatprep.mubr.msk.f32.mxu1 %vm871_vm0, %v1232_v44  ;;  %v1204_v54 = vmul.f32 %v5376_v13, %v1186_v46 }
 0x229   : > { %v1269_v55 = vrot.slane %v1268_v59, 2  ;;  %v1281_v56 = vrot.slane %v1280_v53, 4  ;;  %v1287_v31 = vsel %vm871_vm0, %v1233_v48, -inf  ;;  %4787 = vmatmul.mubr.msk.f32.gmra.mxu1 %vm871_vm0, %v1233_v48  ;;  %v1187_v2 = vmul.f32 %v5025_v41, %v5340_v26 }
 0x22a   : > { %v1258_v57 = vmax.f32 %v1256_v42, %v1257_v50  ;;  %v1277_v60 = vmax.f32 %v1275_v43, %v1276_v51  ;;  %v1288_v61 = vrot.slane %v1287_v31, 4  ;;  %v1222_v62 = vadd.f32 %v5382_v20, %v1204_v54 }
 0x22b   : > { %v1270_v63 = vmax.f32 %v1268_v59, %v1269_v55  ;;  %v1282_v0 = vmax.f32 %v1280_v53, %v1281_v56  ;;  %v1205_v1 = vmul.f32 %v5376_v13, %v1187_v2  ;;  %v1188_v3 = vmul.f32 %v5029_v49, %v5352_v36 }
 0x22c   : > { %v1289_v4 = vmax.f32 %v1287_v31, %v1288_v61  ;;  %v1234_v11 = vmax.f32 %v1222_v62, 0.0  ;;  %v1189_v5 = vmul.f32 %v5027_v58, %v5357_v39  ;;  %v1278_v6 = vrot.slane %v1277_v60, 1 }
 0x22d   : > { %v1271_v26 = vrot.slane %v1270_v63, 1  ;;  %v1283_v8 = vrot.slane %v1282_v0, 2  ;;  %v1223_v9 = vadd.f32 %v5382_v20, %v1205_v1  ;;  %v1206_v7 = vmul.f32 %v5376_v13, %v1188_v3  ;;  %v1744_v1 = vld [vmem:[%s6102_s1] sm:$0xff] }
 0x22e   : > { %v1294_v10 = vsel %vm871_vm0, %v1234_v11, -inf  ;;  %4789 = vmatprep.mubr.msk.f32.mxu1 %vm871_vm0, %v1234_v11  ;;  %v1207_v12 = vmul.f32 %v5376_v13, %v1189_v5  ;;  %v1279_v36 = vmax.f32 %v1277_v60, %v1278_v6  ;;  %v1290_v14 = vrot.slane %v1289_v4, 2 }
 0x22f   : > { %v1272_v15 = vmax.f32 %v1270_v63, %v1271_v26  ;;  %v1295_v17 = vrot.slane %v1294_v10, 4  ;;  %v1235_v18 = vmax.f32 %v1223_v9, 0.0  ;;  %v1224_v39 = vadd.f32 %v5382_v20, %v1206_v7 }
 0x230   : > { %v1225_v19 = vadd.f32 %v5382_v20, %v1207_v12  ;;  %v1284_v22 = vmax.f32 %v1282_v0, %v1283_v8  ;;  %v1291_v24 = vmax.f32 %v1289_v4, %v1290_v14  ;;  %v1502_v25 = vsel %vm1501_vm1, %v5411_v23, %v1244_v45  ;;  %v1745_v0 = vld [vmem:[%s6102_s1 + $0x8] sm:$0xff] }
 0x231   : > { %v1296_v27 = vmax.f32 %v1294_v10, %v1295_v17  ;;  %v1301_v28 = vsel %vm871_vm0, %v1235_v18, -inf  ;;  %4790 = vmatmul.mubr.msk.f32.gmra.mxu1 %vm871_vm0, %v1235_v18  ;;  %v1236_v13 = vmax.f32 %v1224_v39, 0.0  ;;  %v1504_v29 = vsel %vm1503_vm2, %v1258_v57, %v1502_v25  ;;  %4800 = vmatprep.subr.mxu1 %v1745_v0 }
 0x232   : > { %v1302_v52 = vrot.slane %v1301_v28, 4  ;;  %v1237_v30 = vmax.f32 %v1225_v19, 0.0  ;;  %v1285_v16 = vrot.slane %v1284_v22, 1  ;;  %v1292_v32 = vrot.slane %v1291_v24, 1  ;;  %4801 = vmatpush3.msra.mxu1 %v1745_v0 }
 0x233   : > { %v1297_v33 = vrot.slane %v1296_v27, 2  ;;  %v1308_v20 = vsel %vm871_vm0, %v1236_v13, -inf  ;;  %4792 = vmatprep.mubr.msk.f32.mxu1 %vm871_vm0, %v1236_v13  ;;  %v1506_v34 = vsel %vm1505_vm3, %v1265_v47, %v1504_v29  ;;  %4802 = vmatprep.subr.mxu1 %v1744_v1  ;;  %v5094_v5 = vmov 1966171168  }
 0x234   : > { %v1303_v23 = vmax.f32 %v1301_v28, %v1302_v52  ;;  %v1309_v21 = vrot.slane %v1308_v20, 4  ;;  %v1315_v35 = vsel %vm871_vm0, %v1237_v30, -inf  ;;  %v1286_v37 = vmax.f32 %v1284_v22, %v1285_v16  ;;  %4803 = vmatpush3.msra.mxu1 %v1744_v1 }
 0x235   : > { %v1298_v38 = vmax.f32 %v1296_v27, %v1297_v33  ;;  %v1316_v40 = vrot.slane %v1315_v35, 4  ;;  %4793 = vmatmul.mubr.msk.f32.gmra.mxu1 %vm871_vm0, %v1237_v30  ;;  %v1293_v41 = vmax.f32 %v1291_v24, %v1292_v32  ;;  %v1508_v42 = vsel %vm1507_vm4, %v1272_v15, %v1506_v34 }
 0x236   : > { %v1304_v43 = vrot.slane %v1303_v23, 2  ;;  %v1310_v44 = vmax.f32 %v1308_v20, %v1309_v21  ;;  %v1510_v46 = vsel %vm1509_vm5, %v1279_v36, %v1508_v42  ;;  %v1601_v6 = vunpack.c.l.s4 %v5094_v5  ;;  %v4523_v36 = vld [vmem:[%s6103_s10] ss:$0 sm:$0xff] }
 0x237   : > { %v1299_v58 = vrot.slane %v1298_v38, 1  ;;  %v1317_v45 = vmax.f32 %v1315_v35, %v1316_v40  ;;  %v1512_v47 = vsel %vm1511_vm6, %v1286_v37, %v1510_v46  ;;  %v1603_v26 = vlaneseq  ;;  %v4526_v5 = vld [vmem:[%s6104_s29] ss:$0 sm:$0xff]  ;;  %s6108_s29 = sld [smem:[#allocation3_spill]] }
 0x238   : > { %v1305_v59 = vmax.f32 %v1303_v23, %v1304_v43  ;;  %v1311_v48 = vrot.slane %v1310_v44, 2  ;;  %v1514_v49 = vsel %vm1513_vm7, %v1293_v41, %v1512_v47  ;;  %v1602_v9 = vunpack.c.0.s8 %v1601_v6 }
 0x239   : > { %v1318_v50 = vrot.slane %v1317_v45, 2  ;;  %4797 = vmatprep.mubr.msk.f32.mxu0 %vm871_vm0, %v1514_v49  ;;  %v1300_v54 = vmax.f32 %v1298_v38, %v1299_v58  ;;  %v1604_v7 = vshrl.u32 %v1603_v26, 7 }
 0x23a   : > { %v1306_v51 = vrot.slane %v1305_v59, 1  ;;  %v1312_v53 = vmax.f32 %v1310_v44, %v1311_v48 }
 0x23b   : > { %v1319_v55 = vmax.f32 %v1317_v45, %v1318_v50  ;;  %v5467_v15 = vsub.s32 %v1602_v9, %v1604_v7  ;;  %v5471_v24 = vsub.s32 0, %v1604_v7 }
 0x23c   : > { %v1307_v56 = vmax.f32 %v1305_v59, %v1306_v51  ;;  %v1313_v31 = vrot.slane %v1312_v53, 1 }
 0x23d   : > { %v1320_v2 = vrot.slane %v1319_v55, 1 }
 0x23e   : > { %v1314_v57 = vmax.f32 %v1312_v53, %v1313_v31  ;;  %v1515_v61 = vsel %vm1501_vm1, %v1307_v56, %v1300_v54 }
 0x23f   : > { %v1321_v60 = vmax.f32 %v1319_v55, %v1320_v2 }
 0x240   : > { %v1516_v62 = vsel %vm1503_vm2, %v1314_v57, %v1515_v61 }
 0x241   : > { %v1517_v63 = vsel %vm1505_vm3, %v1321_v60, %v1516_v62 }
 0x242   : > { %4798 = vmatmul.mubr.msk.f32.vlgmr.msra.gmra.mxu0 %vm871_vm0, %v1517_v63 }
 0x2dd   : > { %v4779_v3 = vpop.f32.mrf.mxu1 }
 0x2df   : > { %v1424_v4 = vpop.f32.mrf.mxu1 }
 0x2e1   : > { %v4782_v11 = vpop.f32.mrf.mxu1 }
 0x2e3   : > { %v1434_v8 = vpop.f32.mrf.mxu1 }
 0x2e5   : > { %v4785_v12 = vpop.f32.mrf.mxu1 }
 0x2e7   : > { %v1444_v19 = vpop.f32.mrf.mxu1 }
 0x2e9   : > { %v4788_v13 = vpop.f32.mrf.mxu1 }
 0x2eb   : > { %v1454_v35 = vpop.f32.mrf.mxu1 }
 0x2f1   : > { %v4791_v44 = vpop.f32.mrf.mxu1 }
 0x2f3   : > { %v1464_v50 = vpop.f32.mrf.mxu1 }
 0x2f5   : > { %v4794_v2 = vpop.f32.mrf.mxu1 }
 0x2f7   : > { %v1474_v0 = vpop.f32.mrf.mxu1 }
 0x302   : > { %v4799_v10 = vpop.f32.mrf.mxu0 }
 0x303   : > { %v1594_v28 = vadd.f32 %v4799_v10, %v4523_v36 }
 0x304   : > { %v1588_v14 = vpop.f32.mrf.mxu0 }
 0x305   : > { %v1589_v17 = vadd.f32 %v4523_v36, %v1588_v14  ;;  %v1654_v23 = vrot.slane %v1594_v28, %v5467_v15 }
 0x307   : > { %v1599_v18 = vcombine.high %v1589_v17, %v1589_v17  ;;  %v1606_v39 = vrot.slane %v1589_v17, %v5467_v15  ;;  %v1655_v46 = vcombine.high %v1654_v23, %v1654_v23  ;;  %v1662_v59 = vrot.slane %v1654_v23, %v5467_v15 }
 0x309   : > { %v1613_v22 = vrot.slane %v1599_v18, %v5467_v15  ;;  %v1614_v25 = vcombine.high %v1606_v39, %v1606_v39  ;;  %v1622_v27 = vrot.slane %v1606_v39, %v5467_v15  ;;  %v1669_v51 = vrot.slane %v1655_v46, %v5467_v15 }
 0x30a   : > { %v1670_v55 = vcombine.high %v1662_v59, %v1662_v59  ;;  %v1707_v56 = vrot.slane %v1662_v59, %v5471_v24 }
 0x30b   : > { %v1615_v29 = vcombine.high %v1613_v22, %v1613_v22  ;;  %v1636_v52 = vrot.slane %v1614_v25, %v5467_v15  ;;  %v1644_v30 = vcombine.high %v1622_v27, %v1622_v27  ;;  %v1675_v16 = vrot.slane %v1622_v27, %v5471_v24 }
 0x30c   : > { %v1629_v32 = vrot.slane %v1613_v22, %v5467_v15  ;;  %v1671_v57 = vcombine.high %v1669_v51, %v1669_v51  ;;  %v1711_v60 = vrot.slane %v1669_v51, %v5471_v24  ;;  %v1715_v62 = vrot.slane %v1670_v55, %v5471_v24 }
 0x30d   : > { %v1646_v33 = vcombine.high %v1636_v52, %v1636_v52  ;;  %v1679_v20 = vrot.slane %v1636_v52, %v5471_v24  ;;  %v1683_v34 = vrot.slane %v1644_v30, %v5471_v24  ;;  %v1732_v21 = vadd.f32 %v1675_v16, %v1424_v4 }
 0x30e   : > { %v1643_v37 = vrot.slane %v1615_v29, %v5467_v15  ;;  %v1645_v42 = vcombine.high %v1629_v32, %v1629_v32  ;;  %v1691_v43 = vrot.slane %v1629_v32, %v5471_v24  ;;  %v1740_v63 = vadd.f32 %v1707_v56, %v1464_v50 }
 0x30f   : > { %v1733_v38 = vadd.f32 %v4779_v3, %v1679_v20  ;;  %v1734_v40 = vadd.f32 %v1683_v34, %v1434_v8  ;;  %v1687_v41 = vrot.slane %v1646_v33, %v5471_v24  ;;  %4804 = vmatprep.mubr.msk.f32.mxu1 %vm1760_vm8, %v1732_v21  ;;  %v1741_v1 = vadd.f32 %v4791_v44, %v1711_v60 }
 0x310   : > { %v1647_v58 = vcombine.high %v1643_v37, %v1643_v37  ;;  %v1695_v47 = vrot.slane %v1643_v37, %v5471_v24  ;;  %v1736_v48 = vadd.f32 %v1691_v43, %v1444_v19  ;;  %v1699_v49 = vrot.slane %v1645_v42, %v5471_v24 }
 0x311   : > { %4805 = vmatmul.mubr.msk.f32.vlgmr.msra.gmra.mxu1 %vm1760_vm8, %v1733_v38  ;;  %v1735_v45 = vadd.f32 %v4782_v11, %v1687_v41  ;;  %v1719_v3 = vrot.slane %v1671_v57, %v5471_v24  ;;  %v1742_v4 = vadd.f32 %v1715_v62, %v1474_v0 }
 0x312   : > { %4807 = vmatprep.mubr.msk.f32.mxu1 %vm1760_vm8, %v1734_v40  ;;  %v1737_v53 = vadd.f32 %v4785_v12, %v1695_v47  ;;  %v1703_v54 = vrot.slane %v1647_v58, %v5471_v24  ;;  %v1738_v31 = vadd.f32 %v1699_v49, %v1454_v35 }
 0x313   : > { %v1743_v11 = vadd.f32 %v4794_v2, %v1719_v3 }
 0x314   : > { %v1739_v61 = vadd.f32 %v4788_v13, %v1703_v54 }
 0x315   : > { %4808 = vmatmul.mubr.msk.f32.gmra.mxu1 %vm1760_vm8, %v1735_v45 }
 0x316   : > { %4810 = vmatprep.mubr.msk.f32.mxu1 %vm1760_vm8, %v1736_v48 }
 0x319   : > { %4811 = vmatmul.mubr.msk.f32.gmra.mxu1 %vm1760_vm8, %v1737_v53 }
 0x31a   : > { %4813 = vmatprep.mubr.msk.f32.mxu1 %vm1760_vm8, %v1738_v31 }
 0x31d   : > { %4814 = vmatmul.mubr.msk.f32.gmra.mxu1 %vm1760_vm8, %v1739_v61 }
 0x31e   : > { %4816 = vmatprep.mubr.msk.f32.mxu1 %vm1760_vm8, %v1740_v63 }
 0x321   : > { %4817 = vmatmul.mubr.msk.f32.gmra.mxu1 %vm1760_vm8, %v1741_v1 }
 0x322   : > { %4819 = vmatprep.mubr.msk.f32.mxu1 %vm1760_vm8, %v1742_v4 }
 0x325   : > { %4820 = vmatmul.mubr.msk.f32.gmra.mxu1 %vm1760_vm8, %v1743_v11 }
 0x3d1   : > { %v4806_v6 = vpop.f32.mrf.mxu1 }
 0x3d2   : > { %v1869_v26 = vadd.f32 %v4806_v6, %v4526_v5 }
 0x3d3   : > { %v1863_v8 = vpop.f32.mrf.mxu1 }
 0x3d4   : > { %v1864_v9 = vadd.f32 %v4526_v5, %v1863_v8  ;;  %v1925_v7 = vsel %vm1760_vm8, %v1869_v26, 0.0 }
 0x3d5   : > { %1926 = vadd.xlane.f32.xlu1 %v1925_v7  ;;  %v4809_v10 = vpop.f32.mrf.mxu1 }
 0x3d6   : > { %v1879_v12 = vadd.f32 %v4809_v10, %v4526_v5  ;;  %v1922_v36 = vsel %vm1760_vm8, %v1864_v9, 0.0 }
 0x3d7   : > { %1923 = vadd.xlane.f32.xlu0 %v1922_v36  ;;  %v1873_v14 = vpop.f32.mrf.mxu1 }
 0x3d8   : > { %v1874_v17 = vadd.f32 %v4526_v5, %v1873_v14  ;;  %v1931_v18 = vsel %vm1760_vm8, %v1879_v12, 0.0 }
 0x3d9   : > { %1932 = vadd.xlane.f32.xlu1 %v1931_v18  ;;  %v4812_v39 = vpop.f32.mrf.mxu1 }
 0x3da   : > { %v1889_v19 = vadd.f32 %v4812_v39, %v4526_v5  ;;  %v1928_v22 = vsel %vm1760_vm8, %v1874_v17, 0.0 }
 0x3db   : > { %1929 = vadd.xlane.f32.xlu0 %v1928_v22  ;;  %v1883_v25 = vpop.f32.mrf.mxu1 }
 0x3dc   : > { %v1884_v27 = vadd.f32 %v4526_v5, %v1883_v25  ;;  %v1937_v28 = vsel %vm1760_vm8, %v1889_v19, 0.0 }
 0x3dd   : > { %1938 = vadd.xlane.f32.xlu1 %v1937_v28  ;;  %v4815_v13 = vpop.f32.mrf.mxu1 }
 0x3de   : > { %v1899_v29 = vadd.f32 %v4815_v13, %v4526_v5  ;;  %v1934_v52 = vsel %vm1760_vm8, %v1884_v27, 0.0 }
 0x3df   : > { %1935 = vadd.xlane.f32.xlu0 %v1934_v52  ;;  %v1893_v30 = vpop.f32.mrf.mxu1 }
 0x3e0   : > { %v1894_v16 = vadd.f32 %v4526_v5, %v1893_v30  ;;  %v1943_v32 = vsel %vm1760_vm8, %v1899_v29, 0.0 }
 0x3e1   : > { %1944 = vadd.xlane.f32.xlu1 %v1943_v32  ;;  %v4818_v33 = vpop.f32.mrf.mxu1 }
 0x3e2   : > { %v5514_v20 = vadd.f32 %v4818_v33, %v4526_v5  ;;  %v1940_v34 = vsel %vm1760_vm8, %v1894_v16, 0.0 }
 0x3e3   : > { %v1903_v23 = vpop.f32.mrf.mxu1  ;;  %1941 = vadd.xlane.f32.xlu0 %v1940_v34 }
 0x3e4   : > { %v5517_v21 = vadd.f32 %v4526_v5, %v1903_v23  ;;  %v1949_v40 = vsel %vm1760_vm8, %v5514_v20, 0.0 }
 0x3e5   : > { %v4821_v35 = vpop.f32.mrf.mxu1 }
 0x3e6   : > { %v5519_v37 = vadd.f32 %v4821_v35, %v4526_v5  ;;  %v1946_v38 = vsel %vm1760_vm8, %v5517_v21, 0.0 }
 0x3e7   : > { %v1913_v41 = vpop.f32.mrf.mxu1  ;;  %1947 = vadd.xlane.f32.xlu1 %v1946_v38  ;;  %1950 = vadd.xlane.f32.xlu0 %v1949_v40 }
 0x3e8   : > { %v5525_v42 = vadd.f32 %v4526_v5, %v1913_v41  ;;  %v1955_v43 = vsel %vm1760_vm8, %v5519_v37, 0.0 }
 0x3ea   : > { %v1952_v44 = vsel %vm1760_vm8, %v5525_v42, 0.0 }
 0x3eb   : > { %1956 = vadd.xlane.f32.xlu1 %v1955_v43  ;;  %1953 = vadd.xlane.f32.xlu0 %v1952_v44  ;;  %v1749_v44 = vld [vmem:[%s6105_s12] sm:$0xff] }
 0x45e   : > { %v1927_v46 = vpop.xlane.xlu1 %1926 }
 0x45f   : > { %v1960_v58 = vmul.f32 0.0625, %v1927_v46  ;;  %v1752_v46 = vld [vmem:[%s6105_s12 + $0x18] sm:$0xff] }
 0x460   : > { %v1924_v45 = vpop.xlane.xlu0 %1923  ;;  %4844 = vmatprep.subr.mxu1 %v1752_v46 }
 0x461   : > { %v5531_v47 = vsub.f32 %v1869_v26, %v1960_v58  ;;  %v1959_v59 = vmul.f32 0.0625, %v1924_v45  ;;  %4845 = vmatpush3.msra.mxu1 %v1752_v46  ;;  %v1751_v58 = vld [vmem:[%s6105_s12 + $0x10] sm:$0xff] }
 0x462   : > { %v1933_v48 = vpop.xlane.xlu1 %1932  ;;  %4846 = vmatprep.subr.mxu1 %v1751_v58 }
 0x463   : > { %v5533_v49 = vsub.f32 %v1864_v9, %v1959_v59  ;;  %v1962_v50 = vmul.f32 0.0625, %v1933_v48  ;;  %v1984_v51 = vmul.f32 %v5531_v47, %v5531_v47  ;;  %4847 = vmatpush3.msra.mxu1 %v1751_v58 }
 0x464   : > { %v1930_v53 = vpop.xlane.xlu0 %1929 }
 0x465   : > { %v5537_v54 = vsub.f32 %v1879_v12, %v1962_v50  ;;  %v1961_v55 = vmul.f32 0.0625, %v1930_v53  ;;  %v1998_v56 = vsel %vm1760_vm8, %v1984_v51, 0.0  ;;  %v1983_v31 = vmul.f32 %v5533_v49, %v5533_v49 }
 0x466   : > { %v1939_v2 = vpop.xlane.xlu1 %1938  ;;  %1999 = vadd.xlane.f32.xlu1 %v1998_v56 }
 0x467   : > { %v5542_v57 = vsub.f32 %v1874_v17, %v1961_v55  ;;  %v1964_v60 = vmul.f32 0.0625, %v1939_v2  ;;  %v1995_v61 = vsel %vm1760_vm8, %v1983_v31, 0.0  ;;  %v1986_v62 = vmul.f32 %v5537_v54, %v5537_v54 }
 0x468   : > { %v1936_v63 = vpop.xlane.xlu0 %1935  ;;  %1996 = vadd.xlane.f32.xlu0 %v1995_v61 }
 0x469   : > { %v5547_v0 = vsub.f32 %v1889_v19, %v1964_v60  ;;  %v1963_v1 = vmul.f32 0.0625, %v1936_v63  ;;  %v2004_v3 = vsel %vm1760_vm8, %v1986_v62, 0.0  ;;  %v1985_v4 = vmul.f32 %v5542_v57, %v5542_v57 }
 0x46a   : > { %v1945_v11 = vpop.xlane.xlu1 %1944  ;;  %2005 = vadd.xlane.f32.xlu1 %v2004_v3 }
 0x46b   : > { %v5552_v5 = vsub.f32 %v1884_v27, %v1963_v1  ;;  %v1966_v6 = vmul.f32 0.0625, %v1945_v11  ;;  %v2001_v26 = vsel %vm1760_vm8, %v1985_v4, 0.0  ;;  %v1988_v8 = vmul.f32 %v5547_v0, %v5547_v0 }
 0x46c   : > { %2002 = vadd.xlane.f32.xlu0 %v2001_v26  ;;  %v1942_v9 = vpop.xlane.xlu0 %1941 }
 0x46d   : > { %v5557_v7 = vsub.f32 %v1899_v29, %v1966_v6  ;;  %v1965_v10 = vmul.f32 0.0625, %v1942_v9  ;;  %v2010_v12 = vsel %vm1760_vm8, %v1988_v8, 0.0  ;;  %v1987_v36 = vmul.f32 %v5552_v5, %v5552_v5 }
 0x46e   : > { %2011 = vadd.xlane.f32.xlu1 %v2010_v12 }
 0x46f   : > { %v5562_v14 = vsub.f32 %v1894_v16, %v1965_v10  ;;  %v2007_v17 = vsel %vm1760_vm8, %v1987_v36, 0.0  ;;  %v1990_v18 = vmul.f32 %v5557_v7, %v5557_v7 }
 0x470   : > { %v1948_v39 = vpop.xlane.xlu1 %1947  ;;  %2008 = vadd.xlane.f32.xlu0 %v2007_v17  ;;  %v1951_v19 = vpop.xlane.xlu0 %1950 }
 0x471   : > { %v1967_v22 = vmul.f32 0.0625, %v1948_v39  ;;  %v1968_v25 = vmul.f32 0.0625, %v1951_v19  ;;  %v2016_v27 = vsel %vm1760_vm8, %v1990_v18, 0.0  ;;  %v1989_v28 = vmul.f32 %v5562_v14, %v5562_v14  ;;  %v5610_v39 = vld [vmem:[%s6106_s2] ss:$0 sm:$0xff] }
 0x472   : > { %2017 = vadd.xlane.f32.xlu1 %v2016_v27 }
 0x473   : > { %v5571_v13 = vsub.f32 %v5517_v21, %v1967_v22  ;;  %v5574_v29 = vsub.f32 %v5514_v20, %v1968_v25  ;;  %v2013_v52 = vsel %vm1760_vm8, %v1989_v28, 0.0 }
 0x474   : > { %v1957_v30 = vpop.xlane.xlu1 %1956  ;;  %2014 = vadd.xlane.f32.xlu0 %v2013_v52  ;;  %v1954_v16 = vpop.xlane.xlu0 %1953  ;;  %v5616_v52 = vld [vmem:[%s6107_s30] ss:$0 sm:$0xff]  ;;  %s5097_s30 = smov 104  }
 0x475   : > { %v1970_v32 = vmul.f32 0.0625, %v1957_v30  ;;  %v1969_v33 = vmul.f32 0.0625, %v1954_v16  ;;  %v1991_v34 = vmul.f32 %v5571_v13, %v5571_v13  ;;  %v1992_v23 = vmul.f32 %v5574_v29, %v5574_v29 }
 0x477   : > { %v5582_v35 = vsub.f32 %v5519_v37, %v1970_v32  ;;  %v5585_v21 = vsub.f32 %v5525_v42, %v1969_v33  ;;  %v2019_v20 = vsel %vm1760_vm8, %v1991_v34, 0.0  ;;  %v2022_v38 = vsel %vm1760_vm8, %v1992_v23, 0.0  ;;  %v1750_v42 = vld [vmem:[%s6105_s12 + $0x8] sm:$0xff] }
 0x478   : > { %2020 = vadd.xlane.f32.xlu1 %v2019_v20  ;;  %2023 = vadd.xlane.f32.xlu0 %v2022_v38 }
 0x479   : > { %v1994_v40 = vmul.f32 %v5582_v35, %v5582_v35  ;;  %v1993_v41 = vmul.f32 %v5585_v21, %v5585_v21  ;;  %4822 = vmatprep.subr.mxu0 %v1750_v42 }
 0x47a   : > { %4823 = vmatpush3.msra.mxu0 %v1750_v42 }
 0x47b   : > { %v2028_v43 = vsel %vm1760_vm8, %v1994_v40, 0.0  ;;  %v2025_v37 = vsel %vm1760_vm8, %v1993_v41, 0.0  ;;  %4824 = vmatprep.subr.mxu0 %v1749_v44 }
 0x47c   : > { %2029 = vadd.xlane.f32.xlu1 %v2028_v43  ;;  %2026 = vadd.xlane.f32.xlu0 %v2025_v37 }
 0x47d   : > { %4825 = vmatpush3.msra.mxu0 %v1749_v44 }
 0x4ef   : > { %v2000_v45 = vpop.xlane.xlu1 %1999 }
 0x4f0   : > { %v2032_v59 = vmul.f32 0.0625, %v2000_v45 }
 0x4f1   : > { %v1997_v48 = vpop.xlane.xlu0 %1996 }
 0x4f2   : > { %v2044_v50 = vadd.f32 1e-05, %v2032_v59  ;;  %v2031_v51 = vmul.f32 0.0625, %v1997_v48 }
 0x4f3   : > { %v2006_v53 = vpop.xlane.xlu1 %2005 }
 0x4f4   : > { %5030 = vrsqrt.f32 %v2044_v50  ;;  %v2043_v55 = vadd.f32 1e-05, %v2031_v51  ;;  %v2034_v56 = vmul.f32 0.0625, %v2006_v53 }
 0x4f5   : > { %v2003_v31 = vpop.xlane.xlu0 %2002 }
 0x4f6   : > { %5032 = vrsqrt.f32 %v2043_v55  ;;  %v2046_v2 = vadd.f32 1e-05, %v2034_v56  ;;  %v2033_v60 = vmul.f32 0.0625, %v2003_v31 }
 0x4f7   : > { %v2012_v61 = vpop.xlane.xlu1 %2011 }
 0x4f8   : > { %5034 = vrsqrt.f32 %v2046_v2  ;;  %v2045_v62 = vadd.f32 1e-05, %v2033_v60  ;;  %v2036_v63 = vmul.f32 0.0625, %v2012_v61 }
 0x4f9   : > { %v2009_v1 = vpop.xlane.xlu0 %2008 }
 0x4fa   : > { %5036 = vrsqrt.f32 %v2045_v62  ;;  %v2048_v3 = vadd.f32 1e-05, %v2036_v63  ;;  %v2035_v4 = vmul.f32 0.0625, %v2009_v1 }
 0x4fb   : > { %v2018_v11 = vpop.xlane.xlu1 %2017 }
 0x4fc   : > { %5038 = vrsqrt.f32 %v2048_v3  ;;  %v2047_v6 = vadd.f32 1e-05, %v2035_v4  ;;  %v2038_v26 = vmul.f32 0.0625, %v2018_v11 }
 0x4fd   : > { %v2015_v8 = vpop.xlane.xlu0 %2014 }
 0x4fe   : > { %5040 = vrsqrt.f32 %v2047_v6  ;;  %v2050_v9 = vadd.f32 1e-05, %v2038_v26  ;;  %v2037_v10 = vmul.f32 0.0625, %v2015_v8 }
 0x500   : > { %5042 = vrsqrt.f32 %v2050_v9  ;;  %v2049_v12 = vadd.f32 1e-05, %v2037_v10 }
 0x501   : > { %v5031_v36 = vpop.eup %5030  ;;  %v2021_v17 = vpop.xlane.xlu1 %2020 }
 0x502   : > { %v2024_v18 = vpop.xlane.xlu0 %2023  ;;  %v2068_v19 = vmul.f32 %v5031_v36, %v5531_v47  ;;  %5044 = vrsqrt.f32 %v2049_v12  ;;  %v2039_v22 = vmul.f32 0.0625, %v2021_v17 }
 0x503   : > { %v2040_v25 = vmul.f32 0.0625, %v2024_v18  ;;  %v5033_v27 = vpop.eup %5032 }
 0x504   : > { %v2051_v28 = vadd.f32 1e-05, %v2039_v22  ;;  %v2067_v30 = vmul.f32 %v5033_v27, %v5533_v49  ;;  %v2086_v16 = vmul.f32 %v5610_v39, %v2068_v19 }
 0x505   : > { %v5035_v32 = vpop.eup %5034  ;;  %v2052_v33 = vadd.f32 1e-05, %v2040_v25  ;;  %v2030_v34 = vpop.xlane.xlu1 %2029 }
 0x506   : > { %v2027_v23 = vpop.xlane.xlu0 %2026  ;;  %v2042_v20 = vmul.f32 0.0625, %v2030_v34  ;;  %v2085_v38 = vmul.f32 %v5610_v39, %v2067_v30  ;;  %5046 = vrsqrt.f32 %v2051_v28  ;;  %v2104_v41 = vadd.f32 %v5616_v52, %v2086_v16 }
 0x507   : > { %v2041_v47 = vmul.f32 0.0625, %v2027_v23  ;;  %v5037_v40 = vpop.eup %5036  ;;  %v2070_v43 = vmul.f32 %v5035_v32, %v5537_v54  ;;  %5048 = vrsqrt.f32 %v2052_v33 }
 0x508   : > { %v2054_v37 = vadd.f32 1e-05, %v2042_v20  ;;  %v2103_v49 = vadd.f32 %v5616_v52, %v2085_v38  ;;  %v2069_v44 = vmul.f32 %v5037_v40, %v5542_v57  ;;  %v2116_v58 = vmax.f32 %v2104_v41, 0.0 }
 0x509   : > { %v2053_v42 = vadd.f32 1e-05, %v2041_v47  ;;  %v5039_v46 = vpop.eup %5038  ;;  %v2088_v45 = vmul.f32 %v5610_v39, %v2070_v43 }
 0x50a   : > { %5050 = vrsqrt.f32 %v2054_v37  ;;  %v2115_v59 = vmax.f32 %v2103_v49, 0.0  ;;  %v2087_v48 = vmul.f32 %v5610_v39, %v2069_v44  ;;  %v2072_v50 = vmul.f32 %v5039_v46, %v5547_v0 }
 0x50b   : > { %v5041_v51 = vpop.eup %5040  ;;  %5052 = vrsqrt.f32 %v2053_v42  ;;  %v2134_v54 = vsel %vm1760_vm8, %v2116_v58, -inf  ;;  %v2106_v53 = vadd.f32 %v5616_v52, %v2088_v45 }
 0x50c   : > { %v2127_v55 = vsel %vm1760_vm8, %v2115_v59, -inf  ;;  %4826 = vmatprep.mubr.msk.f32.mxu0 %vm1760_vm8, %v2115_v59  ;;  %v2135_v57 = vrot.slane %v2134_v54, 4  ;;  %v2105_v56 = vadd.f32 %v5616_v52, %v2087_v48  ;;  %v2071_v31 = vmul.f32 %v5041_v51, %v5552_v5 }
 0x50d   : > { %v5043_v2 = vpop.eup %5042  ;;  %v2128_v60 = vrot.slane %v2127_v55, 4  ;;  %4827 = vmatmul.mubr.msk.f32.vlgmr.msra.gmra.mxu0 %vm1760_vm8, %v2116_v58  ;;  %v2118_v0 = vmax.f32 %v2106_v53, 0.0  ;;  %v2090_v61 = vmul.f32 %v5610_v39, %v2072_v50 }
 0x50e   : > { %v2136_v62 = vmax.f32 %v2134_v54, %v2135_v57  ;;  %v2117_v63 = vmax.f32 %v2105_v56, 0.0  ;;  %v2089_v1 = vmul.f32 %v5610_v39, %v2071_v31  ;;  %v2074_v3 = vmul.f32 %v5043_v2, %v5557_v7 }
 0x50f   : > { %v5045_v4 = vpop.eup %5044  ;;  %v2129_v11 = vmax.f32 %v2127_v55, %v2128_v60  ;;  %v2148_v6 = vsel %vm1760_vm8, %v2118_v0, -inf  ;;  %v2108_v26 = vadd.f32 %v5616_v52, %v2090_v61 }
 0x510   : > { %v2137_v5 = vrot.slane %v2136_v62, 2  ;;  %v2141_v8 = vsel %vm1760_vm8, %v2117_v63, -inf  ;;  %4829 = vmatprep.mubr.msk.f32.mxu0 %vm1760_vm8, %v2117_v63  ;;  %v2149_v9 = vrot.slane %v2148_v6, 4  ;;  %v2107_v10 = vadd.f32 %v5616_v52, %v2089_v1 }
 0x511   : > { %v2130_v12 = vrot.slane %v2129_v11, 2  ;;  %v2142_v36 = vrot.slane %v2141_v8, 4  ;;  %4830 = vmatmul.mubr.msk.f32.gmra.mxu0 %vm1760_vm8, %v2118_v0  ;;  %v2120_v17 = vmax.f32 %v2108_v26, 0.0  ;;  %v2073_v7 = vmul.f32 %v5045_v4, %v5562_v14 }
 0x512   : > { %v2138_v18 = vmax.f32 %v2136_v62, %v2137_v5  ;;  %v2150_v19 = vmax.f32 %v2148_v6, %v2149_v9  ;;  %v2119_v22 = vmax.f32 %v2107_v10, 0.0  ;;  %v2092_v25 = vmul.f32 %v5610_v39, %v2074_v3 }
 0x513   : > { %v2131_v27 = vmax.f32 %v2129_v11, %v2130_v12  ;;  %v2143_v28 = vmax.f32 %v2141_v8, %v2142_v36  ;;  %v2162_v30 = vsel %vm1760_vm8, %v2120_v17, -inf  ;;  %v2091_v16 = vmul.f32 %v5610_v39, %v2073_v7  ;;  %v5047_v32 = vpop.eup %5046 }
 0x514   : > { %v2139_v33 = vrot.slane %v2138_v18, 1  ;;  %v2151_v34 = vrot.slane %v2150_v19, 2  ;;  %v2155_v23 = vsel %vm1760_vm8, %v2119_v22, -inf  ;;  %4832 = vmatprep.mubr.msk.f32.mxu0 %vm1760_vm8, %v2119_v22  ;;  %v2163_v20 = vrot.slane %v2162_v30, 4  ;;  %v5049_v41 = vpop.eup %5048 }
 0x515   : > { %v2132_v14 = vrot.slane %v2131_v27, 1  ;;  %v2144_v47 = vrot.slane %v2143_v28, 2  ;;  %v2156_v38 = vrot.slane %v2155_v23, 4  ;;  %4833 = vmatmul.mubr.msk.f32.gmra.mxu0 %vm1760_vm8, %v2120_v17  ;;  %v2109_v40 = vadd.f32 %v5616_v52, %v2091_v16 }
 0x516   : > { %v2152_v43 = vmax.f32 %v2150_v19, %v2151_v34  ;;  %v2164_v37 = vmax.f32 %v2162_v30, %v2163_v20  ;;  %v2110_v42 = vadd.f32 %v5616_v52, %v2092_v25  ;;  %v2140_v44 = vmax.f32 %v2138_v18, %v2139_v33 }
 0x517   : > { %v5051_v49 = vpop.eup %5050  ;;  %v2145_v46 = vmax.f32 %v2143_v28, %v2144_v47  ;;  %v2157_v58 = vmax.f32 %v2155_v23, %v2156_v38  ;;  %v2121_v45 = vmax.f32 %v2109_v40, 0.0  ;;  %v2075_v54 = vmul.f32 %v5047_v32, %v5571_v13 }
 0x518   : > { %v5053_v59 = vpop.eup %5052  ;;  %v2153_v48 = vrot.slane %v2152_v43, 1  ;;  %v2165_v50 = vrot.slane %v2164_v37, 2  ;;  %v2122_v51 = vmax.f32 %v2110_v42, 0.0  ;;  %v2133_v53 = vmax.f32 %v2131_v27, %v2132_v14 }
 0x519   : > { %v2158_v55 = vrot.slane %v2157_v58, 2  ;;  %v2169_v57 = vsel %vm1760_vm8, %v2121_v45, -inf  ;;  %4835 = vmatprep.mubr.msk.f32.mxu0 %vm1760_vm8, %v2121_v45  ;;  %v2076_v56 = vmul.f32 %v5049_v41, %v5574_v29  ;;  %v2146_v31 = vrot.slane %v2145_v46, 1 }
 0x51a   : > { %v2166_v2 = vmax.f32 %v2164_v37, %v2165_v50  ;;  %v2170_v60 = vrot.slane %v2169_v57, 4  ;;  %v2176_v0 = vsel %vm1760_vm8, %v2122_v51, -inf  ;;  %4836 = vmatmul.mubr.msk.f32.gmra.mxu0 %vm1760_vm8, %v2122_v51  ;;  %v2154_v61 = vmax.f32 %v2152_v43, %v2153_v48 }
 0x51b   : > { %v2159_v62 = vmax.f32 %v2157_v58, %v2158_v55  ;;  %v2177_v63 = vrot.slane %v2176_v0, 4  ;;  %v2093_v13 = vmul.f32 %v5610_v39, %v2075_v54  ;;  %v2094_v3 = vmul.f32 %v5610_v39, %v2076_v56 }
 0x51c   : > { %v2171_v1 = vmax.f32 %v2169_v57, %v2170_v60  ;;  %v2077_v4 = vmul.f32 %v5053_v59, %v5585_v21  ;;  %v2078_v11 = vmul.f32 %v5051_v49, %v5582_v35  ;;  %v2167_v5 = vrot.slane %v2166_v2, 1 }
 0x51d   : > { %v2160_v29 = vrot.slane %v2159_v62, 1  ;;  %v2178_v6 = vmax.f32 %v2176_v0, %v2177_v63  ;;  %v2111_v26 = vadd.f32 %v5616_v52, %v2093_v13  ;;  %v2112_v9 = vadd.f32 %v5616_v52, %v2094_v3 }
 0x51e   : > { %v2172_v8 = vrot.slane %v2171_v1, 2  ;;  %v2095_v10 = vmul.f32 %v5610_v39, %v2077_v4  ;;  %v2096_v12 = vmul.f32 %v5610_v39, %v2078_v11  ;;  %v2147_v36 = vmax.f32 %v2145_v46, %v2146_v31 }
 0x51f   : > { %v2161_v17 = vmax.f32 %v2159_v62, %v2160_v29  ;;  %v2123_v7 = vmax.f32 %v2111_v26, 0.0  ;;  %v2179_v18 = vrot.slane %v2178_v6, 2  ;;  %v2124_v19 = vmax.f32 %v2112_v9, 0.0  ;;  %v2716_v29 = vld [vmem:[%s6064_s14 + $0x18] sm:$0xff]  ;;  %v2719_v9 = vld [vmem:[%s6066_s16 + $0x8] sm:$0xff] }
 0x520   : > { %v2113_v21 = vadd.f32 %v5616_v52, %v2095_v10  ;;  %v2114_v35 = vadd.f32 %v5616_v52, %v2096_v12  ;;  %v2173_v22 = vmax.f32 %v2171_v1, %v2172_v8  ;;  %v2168_v27 = vmax.f32 %v2166_v2, %v2167_v5  ;;  %4851 = vmatprep.subr.mxu0 %v2716_v29  ;;  %v2721_v26 = vld [vmem:[%s6066_s16 + $0x18] sm:$0xff]  ;;  %v2720_v5 = vld [vmem:[%s6066_s16 + $0x10] sm:$0xff]  ;;  %v2714_v8 = vld [vmem:[%s6064_s14 + $0x8] sm:$0xff] }
 0x521   : > { %v2183_v25 = vsel %vm1760_vm8, %v2123_v7, -inf  ;;  %4838 = vmatprep.mubr.msk.f32.mxu0 %vm1760_vm8, %v2123_v7  ;;  %v2180_v28 = vmax.f32 %v2178_v6, %v2179_v18  ;;  %v2390_v30 = vsel %vm1501_vm1, %v2140_v44, %v2133_v53  ;;  %v2190_v39 = vsel %vm1760_vm8, %v2124_v19, -inf  ;;  %v2715_v6 = vld [vmem:[%s6064_s14 + $0x10] sm:$0xff]  ;;  %4852 = vmatpush3.msra.mxu0 %v2716_v29  ;;  %v2713_v10 = vld [vmem:[%s6064_s14] sm:$0xff] }
 0x522   : > { %v2184_v16 = vrot.slane %v2183_v25, 4  ;;  %4839 = vmatmul.mubr.msk.f32.gmra.mxu0 %vm1760_vm8, %v2124_v19  ;;  %v2125_v32 = vmax.f32 %v2113_v21, 0.0  ;;  %v2126_v33 = vmax.f32 %v2114_v35, 0.0  ;;  %v2191_v34 = vrot.slane %v2190_v39, 4  ;;  %4862 = vmatprep.subr.mxu1 %v2721_v26  ;;  %v2718_v12 = vld [vmem:[%s6066_s16] sm:$0xff] }
 0x523   : > { %v2174_v23 = vrot.slane %v2173_v22, 1  ;;  %v2181_v20 = vrot.slane %v2180_v28, 1  ;;  %v2391_v52 = vsel %vm1503_vm2, %v2147_v36, %v2390_v30  ;;  %4853 = vmatprep.subr.mxu0 %v2715_v6  ;;  %v5716_v36 = vld [vmem:[%s6068_s18 + $0x18] sm:$0xff]  ;;  %v4553_v30 = vld [vmem:[%s6063_s13] ss:$0 sm:$0xff] }
 0x524   : > { %v2185_v14 = vmax.f32 %v2183_v25, %v2184_v16  ;;  %v2197_v47 = vsel %vm1760_vm8, %v2125_v32, -inf  ;;  %4841 = vmatprep.mubr.msk.f32.mxu0 %vm1760_vm8, %v2125_v32  ;;  %v2204_v38 = vsel %vm1760_vm8, %v2126_v33, -inf  ;;  %v2392_v40 = vsel %vm1505_vm3, %v2154_v61, %v2391_v52  ;;  %4854 = vmatpush3.msra.mxu0 %v2715_v6 }
 0x525   : > { %v2192_v41 = vmax.f32 %v2190_v39, %v2191_v34  ;;  %v2198_v43 = vrot.slane %v2197_v47, 4  ;;  %v2205_v37 = vrot.slane %v2204_v38, 4  ;;  %v2175_v42 = vmax.f32 %v2173_v22, %v2174_v23  ;;  %4855 = vmatprep.subr.mxu0 %v2714_v8 }
 0x526   : > { %v2186_v49 = vrot.slane %v2185_v14, 2  ;;  %4842 = vmatmul.mubr.msk.f32.gmra.mxu0 %vm1760_vm8, %v2126_v33  ;;  %v2182_v44 = vmax.f32 %v2180_v28, %v2181_v20  ;;  %v2393_v46 = vsel %vm1507_vm4, %v2161_v17, %v2392_v40  ;;  %v5722_v17 = vld [vmem:[%s6070_s20 + $0x18] sm:$0xff] }
 0x527   : > { %v2193_v58 = vrot.slane %v2192_v41, 2  ;;  %v2199_v45 = vmax.f32 %v2197_v47, %v2198_v43  ;;  %v2206_v59 = vmax.f32 %v2204_v38, %v2205_v37  ;;  %v2394_v48 = vsel %vm1509_vm5, %v2168_v27, %v2393_v46  ;;  %4856 = vmatpush3.msra.mxu0 %v2714_v8 }
 0x528   : > { %v2187_v50 = vmax.f32 %v2185_v14, %v2186_v49  ;;  %v2395_v51 = vsel %vm1511_vm6, %v2175_v42, %v2394_v48  ;;  %4857 = vmatprep.subr.mxu0 %v2713_v10 }
 0x529   : > { %v2194_v54 = vmax.f32 %v2192_v41, %v2193_v58  ;;  %v2200_v53 = vrot.slane %v2199_v45, 2  ;;  %v2207_v55 = vrot.slane %v2206_v59, 2  ;;  %v2396_v57 = vsel %vm1513_vm7, %v2182_v44, %v2395_v51  ;;  %4858 = vmatpush3.msra.mxu0 %v2713_v10 }
 0x52a   : > { %v2188_v56 = vrot.slane %v2187_v50, 1  ;;  %4848 = vmatprep.mubr.msk.f32.mxu1 %vm1760_vm8, %v2396_v57  ;;  %4873 = vmatprep.subr.mxu0 %v5716_v36 }
 0x52b   : > { %v2195_v31 = vrot.slane %v2194_v54, 1  ;;  %v2201_v2 = vmax.f32 %v2199_v45, %v2200_v53  ;;  %v2208_v60 = vmax.f32 %v2206_v59, %v2207_v55 }
 0x52c   : > { %v2189_v0 = vmax.f32 %v2187_v50, %v2188_v56 }
 0x52d   : > { %v2196_v61 = vmax.f32 %v2194_v54, %v2195_v31  ;;  %v2202_v62 = vrot.slane %v2201_v2, 1  ;;  %v2209_v63 = vrot.slane %v2208_v60, 1 }
 0x52f   : > { %v2203_v13 = vmax.f32 %v2201_v2, %v2202_v62  ;;  %v2210_v1 = vmax.f32 %v2208_v60, %v2209_v63  ;;  %v2397_v3 = vsel %vm1501_vm1, %v2196_v61, %v2189_v0 }
 0x531   : > { %v2398_v4 = vsel %vm1503_vm2, %v2203_v13, %v2397_v3 }
 0x532   : > { %v2399_v11 = vsel %vm1505_vm3, %v2210_v1, %v2398_v4 }
 0x533   : > { %4849 = vmatmul.mubr.msk.f32.vlgmr.msra.gmra.mxu1 %vm1760_vm8, %v2399_v11 }
 0x534   : > { %4863 = vmatpush3.msra.mxu1 %v2721_v26 }
 0x535   : > { %4864 = vmatprep.subr.mxu1 %v2720_v5 }
 0x536   : > { %4865 = vmatpush3.msra.mxu1 %v2720_v5 }
 0x537   : > { %4866 = vmatprep.subr.mxu1 %v2719_v9 }
 0x538   : > { %4867 = vmatpush3.msra.mxu1 %v2719_v9 }
 0x539   : > { %4868 = vmatprep.subr.mxu1 %v2718_v12 }
 0x53a   : > { %4869 = vmatpush3.msra.mxu1 %v2718_v12 }
 0x53b   : > { %4884 = vmatprep.subr.mxu1 %v5722_v17 }
 0x5cd   : > { %v5725_v7 = vpop.f32.mrf.mxu0 }
 0x5cf   : > { %v5727_v18 = vpop.f32.mrf.mxu0 }
 0x5d1   : > { %v5729_v19 = vpop.f32.mrf.mxu0 }
 0x5d3   : > { %v5731_v21 = vpop.f32.mrf.mxu0 }
 0x5d5   : > { %v5733_v35 = vpop.f32.mrf.mxu0 }
 0x5d7   : > { %v5735_v22 = vpop.f32.mrf.mxu0 }
 0x5da   : > { %v5737_v25 = vpop.f32.mrf.mxu0 }
 0x5dc   : > { %v5739_v27 = vpop.f32.mrf.mxu0 }
 0x5e2   : > { %v4840_v28 = vpop.f32.mrf.mxu0 }
 0x5e4   : > { %v2353_v32 = vpop.f32.mrf.mxu0 }
 0x5e6   : > { %v4843_v38 = vpop.f32.mrf.mxu0 }
 0x5e8   : > { %v2363_v59 = vpop.f32.mrf.mxu0 }
 0x5f3   : > { %v4850_v16 = vpop.f32.mrf.mxu1 }
 0x5f4   : > { %v2476_v39 = vadd.f32 %v4850_v16, %v4553_v30 }
 0x5f5   : > { %v2470_v33 = vpop.f32.mrf.mxu1 }
 0x5f6   : > { %v2536_v34 = vrot.slane %v2476_v39, %v5467_v15  ;;  %v2471_v23 = vadd.f32 %v4553_v30, %v2470_v33 }
 0x5f8   : > { %v2537_v20 = vcombine.high %v2536_v34, %v2536_v34  ;;  %v2544_v52 = vrot.slane %v2536_v34, %v5467_v15  ;;  %v2481_v14 = vcombine.high %v2471_v23, %v2471_v23  ;;  %v2488_v47 = vrot.slane %v2471_v23, %v5467_v15 }
 0x5fa   : > { %v2551_v40 = vrot.slane %v2537_v20, %v5467_v15  ;;  %v2552_v41 = vcombine.high %v2544_v52, %v2544_v52  ;;  %v2589_v43 = vrot.slane %v2544_v52, %v5471_v24  ;;  %v2495_v37 = vrot.slane %v2481_v14, %v5467_v15 }
 0x5fb   : > { %v2496_v42 = vcombine.high %v2488_v47, %v2488_v47  ;;  %v2504_v49 = vrot.slane %v2488_v47, %v5467_v15 }
 0x5fc   : > { %v2553_v44 = vcombine.high %v2551_v40, %v2551_v40  ;;  %v2593_v46 = vrot.slane %v2551_v40, %v5471_v24  ;;  %v2597_v58 = vrot.slane %v2552_v41, %v5471_v24  ;;  %v2622_v45 = vadd.f32 %v2589_v43, %v2353_v32 }
 0x5fd   : > { %v2497_v48 = vcombine.high %v2495_v37, %v2495_v37  ;;  %v2511_v50 = vrot.slane %v2495_v37, %v5467_v15  ;;  %v2518_v51 = vrot.slane %v2496_v42, %v5467_v15  ;;  %v2526_v54 = vcombine.high %v2504_v49, %v2504_v49 }
 0x5fe   : > { %v2601_v53 = vrot.slane %v2553_v44, %v5471_v24  ;;  %v2623_v55 = vadd.f32 %v4840_v28, %v2593_v46  ;;  %v2624_v57 = vadd.f32 %v2597_v58, %v2363_v59  ;;  %v2683_v56 = vsel %vm2626_vm9, %v2622_v45, -inf }
 0x5ff   : > { %v2684_v31 = vrot.slane %v2683_v56, 4  ;;  %v2525_v2 = vrot.slane %v2497_v48, %v5467_v15  ;;  %v2527_v60 = vcombine.high %v2511_v50, %v2511_v50  ;;  %v2528_v0 = vcombine.high %v2518_v51, %v2518_v51 }
 0x600   : > { %v2625_v61 = vadd.f32 %v4843_v38, %v2601_v53  ;;  %v2690_v62 = vsel %vm2626_vm9, %v2623_v55, -inf  ;;  %v2697_v63 = vsel %vm2626_vm9, %v2624_v57, -inf  ;;  %v2557_v13 = vrot.slane %v2504_v49, %v5471_v24 }
 0x601   : > { %v2685_v1 = vmax.f32 %v2683_v56, %v2684_v31  ;;  %v2691_v3 = vrot.slane %v2690_v62, 4  ;;  %v2698_v4 = vrot.slane %v2697_v63, 4  ;;  %v2529_v11 = vcombine.high %v2525_v2, %v2525_v2 }
 0x602   : > { %v2704_v29 = vsel %vm2626_vm9, %v2625_v61, -inf  ;;  %v2561_v6 = vrot.slane %v2518_v51, %v5471_v24  ;;  %v2565_v26 = vrot.slane %v2526_v54, %v5471_v24  ;;  %v2569_v15 = vrot.slane %v2528_v0, %v5471_v24 }
 0x603   : > { %v2686_v5 = vrot.slane %v2685_v1, 2  ;;  %v2692_v8 = vmax.f32 %v2690_v62, %v2691_v3  ;;  %v2699_v9 = vmax.f32 %v2697_v63, %v2698_v4  ;;  %v2705_v10 = vrot.slane %v2704_v29, 4 }
 0x604   : > { %v2573_v12 = vrot.slane %v2511_v50, %v5471_v24  ;;  %v2577_v28 = vrot.slane %v2525_v2, %v5471_v24  ;;  %v2581_v30 = vrot.slane %v2527_v60, %v5471_v24  ;;  %v2585_v16 = vrot.slane %v2529_v11, %v5471_v24 }
 0x605   : > { %v5769_v39 = vmax.f32 %v2685_v1, %v2686_v5  ;;  %v2693_v32 = vrot.slane %v2692_v8, 2  ;;  %v2700_v33 = vrot.slane %v2699_v9, 2  ;;  %v2614_v34 = vadd.f32 %v2557_v13, %v5727_v18 }
 0x606   : > { %v2615_v23 = vadd.f32 %v5725_v7, %v2561_v6  ;;  %v2616_v20 = vadd.f32 %v2565_v26, %v5731_v21  ;;  %v2617_v52 = vadd.f32 %v5729_v19, %v2569_v15  ;;  %v5776_v38 = vmax.f32 %v2704_v29, %v2705_v10 }
 0x607   : > { %v2688_v14 = vrot.slane %v5769_v39, 1  ;;  %v2694_v47 = vmax.f32 %v2692_v8, %v2693_v32  ;;  %v2618_v40 = vadd.f32 %v2573_v12, %v5735_v22  ;;  %v2619_v24 = vadd.f32 %v5733_v35, %v2577_v28 }
 0x608   : > { %v2620_v41 = vadd.f32 %v2581_v30, %v5739_v27  ;;  %v2621_v43 = vadd.f32 %v5737_v25, %v2585_v16  ;;  %v2627_v18 = vsel %vm2626_vm9, %v2614_v34, -inf  ;;  %v5783_v37 = vmax.f32 %v2699_v9, %v2700_v33 }
 0x609   : > { %v2695_v7 = vrot.slane %v2694_v47, 1  ;;  %v2628_v21 = vrot.slane %v2627_v18, 4  ;;  %v2634_v19 = vsel %vm2626_vm9, %v2615_v23, -inf  ;;  %v2641_v49 = vsel %vm2626_vm9, %v2616_v20, -inf }
 0x60a   : > { %v2635_v42 = vrot.slane %v2634_v19, 4  ;;  %v2648_v44 = vsel %vm2626_vm9, %v2617_v52, -inf  ;;  %v2655_v22 = vsel %vm2626_vm9, %v2618_v40, -inf  ;;  %v2642_v46 = vrot.slane %v2641_v49, 4 }
 0x60b   : > { %v2629_v35 = vmax.f32 %v2627_v18, %v2628_v21  ;;  %v2649_v27 = vrot.slane %v2648_v44, 4  ;;  %v2656_v58 = vrot.slane %v2655_v22, 4  ;;  %v2662_v45 = vsel %vm2626_vm9, %v2619_v24, -inf }
 0x60c   : > { %v2636_v25 = vmax.f32 %v2634_v19, %v2635_v42  ;;  %v2669_v59 = vsel %vm2626_vm9, %v2620_v41, -inf  ;;  %v2676_v48 = vsel %vm2626_vm9, %v2621_v43, -inf  ;;  %v2643_v51 = vmax.f32 %v2641_v49, %v2642_v46 }
 0x60d   : > { %v2630_v50 = vrot.slane %v2629_v35, 2  ;;  %v2650_v54 = vmax.f32 %v2648_v44, %v2649_v27  ;;  %v2657_v53 = vmax.f32 %v2655_v22, %v2656_v58  ;;  %v2663_v57 = vrot.slane %v2662_v45, 4 }
 0x60e   : > { %v2637_v55 = vrot.slane %v2636_v25, 2  ;;  %v2670_v56 = vrot.slane %v2669_v59, 4  ;;  %v2677_v31 = vrot.slane %v2676_v48, 4  ;;  %v2644_v60 = vrot.slane %v2643_v51, 2 }
 0x60f   : > { %v2631_v2 = vmax.f32 %v2629_v35, %v2630_v50  ;;  %v2651_v0 = vrot.slane %v2650_v54, 2  ;;  %v2658_v61 = vrot.slane %v2657_v53, 2  ;;  %v2664_v63 = vmax.f32 %v2662_v45, %v2663_v57  ;;  %v2723_v50 = vld [vmem:[%s6068_s18] sm:$0xff]  ;;  %v2741_v57 = vld [vmem:[%s6074_s24 + $0x18] sm:$0xff] }
 0x610   : > { %v2638_v62 = vmax.f32 %v2636_v25, %v2637_v55  ;;  %v2671_v13 = vmax.f32 %v2669_v59, %v2670_v56  ;;  %v2678_v1 = vmax.f32 %v2676_v48, %v2677_v31  ;;  %v2645_v4 = vmax.f32 %v2643_v51, %v2644_v60  ;;  %v2724_v48 = vld [vmem:[%s6068_s18 + $0x8] sm:$0xff]  ;;  %v2733_v55 = vld [vmem:[%s6072_s22] sm:$0xff] }
 0x611   : > { %v2632_v3 = vrot.slane %v2631_v2, 1  ;;  %v2652_v11 = vmax.f32 %v2650_v54, %v2651_v0  ;;  %v2659_v29 = vmax.f32 %v2657_v53, %v2658_v61  ;;  %v2665_v26 = vrot.slane %v2664_v63, 2  ;;  %v2729_v51 = vld [vmem:[%s6070_s20 + $0x8] sm:$0xff]  ;;  %v2728_v53 = vld [vmem:[%s6070_s20] sm:$0xff] }
 0x612   : > { %v2639_v6 = vrot.slane %v2638_v62, 1  ;;  %v2672_v15 = vrot.slane %v2671_v13, 2  ;;  %v2679_v5 = vrot.slane %v2678_v1, 2  ;;  %v2646_v9 = vrot.slane %v2645_v4, 1  ;;  %v2734_v54 = vld [vmem:[%s6072_s22 + $0x8] sm:$0xff] }
 0x613   : > { %v2633_v8 = vmax.f32 %v2631_v2, %v2632_v3  ;;  %v2653_v10 = vrot.slane %v2652_v11, 1  ;;  %v2660_v12 = vrot.slane %v2659_v29, 1  ;;  %v2666_v30 = vmax.f32 %v2664_v63, %v2665_v26  ;;  %v4556_v2 = vld [vmem:[%s6065_s15] ss:$0 sm:$0xff]  ;;  %v2740_v3 = vld [vmem:[%s6074_s24 + $0x10] sm:$0xff] }
 0x614   : > { %v2640_v28 = vmax.f32 %v2638_v62, %v2639_v6  ;;  %v2673_v16 = vmax.f32 %v2671_v13, %v2672_v15  ;;  %v2680_v32 = vmax.f32 %v2678_v1, %v2679_v5  ;;  %v2689_v33 = vmax.f32 %v5769_v39, %v2688_v14  ;;  %v4559_v60 = vld [vmem:[%s6067_s17] ss:$0 sm:$0xff] }
 0x615   : > { %v2647_v34 = vmax.f32 %v2645_v4, %v2646_v9  ;;  %v2654_v23 = vmax.f32 %v2652_v11, %v2653_v10  ;;  %v2696_v20 = vmax.f32 %v2694_v47, %v2695_v7  ;;  %v2667_v52 = vrot.slane %v2666_v30, 1  ;;  %v2739_v4 = vld [vmem:[%s6074_s24 + $0x8] sm:$0xff]  ;;  %v2738_v6 = vld [vmem:[%s6074_s24] sm:$0xff] }
 0x616   : > { %v2674_v40 = vrot.slane %v2673_v16, 1  ;;  %v2681_v24 = vrot.slane %v2680_v32, 1  ;;  %v2766_v41 = vsel %vm1501_vm1, %v2640_v28, %v2633_v8  ;;  %v2661_v43 = vmax.f32 %v2659_v29, %v2660_v12  ;;  %v4562_v29 = vld [vmem:[%s6069_s19] ss:$0 sm:$0xff] }
 0x617   : > { %v2767_v18 = vsel %vm1503_vm2, %v2647_v34, %v2766_v41  ;;  %v2702_v21 = vrot.slane %v5783_v37, 1  ;;  %v2707_v19 = vrot.slane %v5776_v38, 2  ;;  %v2668_v42 = vmax.f32 %v2666_v30, %v2667_v52  ;;  %v4568_v8 = vld [vmem:[%s6073_s23] ss:$0 sm:$0xff] }
 0x618   : > { %v2768_v49 = vsel %vm1505_vm3, %v2654_v23, %v2767_v18  ;;  %v2773_v39 = vsel %vm1501_vm1, %v2696_v20, %v2689_v33  ;;  %v2675_v14 = vmax.f32 %v2673_v16, %v2674_v40  ;;  %v2682_v22 = vmax.f32 %v2680_v32, %v2681_v24  ;;  %v4565_v28 = vld [vmem:[%s6071_s21] ss:$0 sm:$0xff] }
 0x619   : > { %v2769_v47 = vsel %vm1507_vm4, %v2661_v43, %v2768_v49  ;;  %v2703_v7 = vmax.f32 %v5783_v37, %v2702_v21  ;;  %v2708_v44 = vmax.f32 %v5776_v38, %v2707_v19  ;;  %v2725_v38 = vld [vmem:[%s6068_s18 + $0x10] sm:$0xff]  ;;  %v4571_v34 = vld [vmem:[%s6075_s25] ss:$0 sm:$0xff] }
 0x61a   : > { %v2770_v35 = vsel %vm1509_vm5, %v2668_v42, %v2769_v47  ;;  %v2730_v37 = vld [vmem:[%s6070_s20 + $0x10] sm:$0xff]  ;;  %v5928_v42 = vld [vmem:[%s6108_s29 + $0x8] sm:$0xf] }
 0x61b   : > { %v2771_v46 = vsel %vm1511_vm6, %v2675_v14, %v2770_v35  ;;  %v2709_v27 = vrot.slane %v2708_v44, 1  ;;  %v2774_v25 = vsel %vm1503_vm2, %v2703_v7, %v2773_v39  ;;  %v5933_v14 = vld [vmem:[%s6108_s29] sm:$0xff] }
 0x61c   : > { %v2772_v58 = vsel %vm1513_vm7, %v2682_v22, %v2771_v46 }
 0x61d   : > { %4859 = vmatprep.mubr.msk.f32.mxu0 %vm2626_vm9, %v2772_v58  ;;  %4870 = vmatprep.mubr.msk.f32.mxu1 %vm2626_vm9, %v2772_v58  ;;  %v2710_v45 = vmax.f32 %v2708_v44, %v2709_v27 }
 0x61f   : > { %v2775_v59 = vsel %vm1505_vm3, %v2710_v45, %v2774_v25 }
 0x620   : > { %4860 = vmatmul.mubr.msk.f32.vlgmr.msra.gmra.mxu0 %vm2626_vm9, %v2775_v59  ;;  %4871 = vmatmul.mubr.msk.f32.vlgmr.msra.gmra.mxu1 %vm2626_vm9, %v2775_v59 }
 0x621   : > { %4874 = vmatpush3.msra.mxu0 %v5716_v36  ;;  %4881 = vmatprep.mubr.msk.f32.mxu0 %vm2626_vm9, %v2772_v58  ;;  %v2736_v36 = vld [vmem:[%s6072_s22 + $0x18] sm:$0xff] }
 0x622   : > { %4875 = vmatprep.subr.mxu0 %v2725_v38  ;;  %4885 = vmatpush3.msra.mxu1 %v5722_v17  ;;  %v2735_v17 = vld [vmem:[%s6072_s22 + $0x10] sm:$0xff] }
 0x623   : > { %4876 = vmatpush3.msra.mxu0 %v2725_v38  ;;  %4886 = vmatprep.subr.mxu1 %v2730_v37 }
 0x624   : > { %4877 = vmatprep.subr.mxu0 %v2724_v48  ;;  %4887 = vmatpush3.msra.mxu1 %v2730_v37 }
 0x625   : > { %4878 = vmatpush3.msra.mxu0 %v2724_v48  ;;  %4888 = vmatprep.subr.mxu1 %v2729_v51 }
 0x626   : > { %4879 = vmatprep.subr.mxu0 %v2723_v50  ;;  %4889 = vmatpush3.msra.mxu1 %v2729_v51 }
 0x627   : > { %4880 = vmatpush3.msra.mxu0 %v2723_v50  ;;  %4890 = vmatprep.subr.mxu1 %v2728_v53 }
 0x628   : > { %4882 = vmatmul.mubr.msk.f32.vlgmr.msra.gmra.mxu0 %vm2626_vm9, %v2775_v59  ;;  %4895 = vmatprep.subr.mxu0 %v2736_v36 }
 0x629   : > { %4896 = vmatpush3.msra.mxu0 %v2736_v36  ;;  %4891 = vmatpush3.msra.mxu1 %v2728_v53 }
 0x62a   : > { %4897 = vmatprep.subr.mxu0 %v2735_v17  ;;  %4906 = vmatprep.subr.mxu1 %v2741_v57 }
 0x62b   : > { %4898 = vmatpush3.msra.mxu0 %v2735_v17 }
 0x62c   : > { %4899 = vmatprep.subr.mxu0 %v2734_v54 }
 0x62d   : > { %4900 = vmatpush3.msra.mxu0 %v2734_v54 }
 0x62e   : > { %4901 = vmatprep.subr.mxu0 %v2733_v55 }
 0x62f   : > { %4902 = vmatpush3.msra.mxu0 %v2733_v55 }
 0x6e0   : > { %v4861_v56 = vpop.f32.mrf.mxu0  ;;  %v4872_v31 = vpop.f32.mrf.mxu1 }
 0x6e1   : > { %v2852_v13 = vadd.f32 %v4861_v56, %v4556_v2  ;;  %v2933_v1 = vadd.f32 %v4872_v31, %v4559_v60 }
 0x6e2   : > { %v2846_v0 = vpop.f32.mrf.mxu0  ;;  %v2927_v61 = vpop.f32.mrf.mxu1 }
 0x6e3   : > { %v2847_v62 = vadd.f32 %v4556_v2, %v2846_v0  ;;  %v2928_v63 = vadd.f32 %v4559_v60, %v2927_v61 }
 0x6e5   : > { %4892 = vmatprep.mubr.msk.f32.mxu1 %vm2626_vm9, %v2928_v63  ;;  %4903 = vmatprep.mubr.msk.f32.mxu0 %vm2626_vm9, %v2847_v62 }
 0x6e6   : > { %4893 = vmatmul.mubr.msk.f32.vlgmr.msra.gmra.mxu1 %vm2626_vm9, %v2933_v1  ;;  %4904 = vmatmul.mubr.msk.f32.vlgmr.msra.gmra.mxu0 %vm2626_vm9, %v2852_v13 }
 0x6e7   : > { %4907 = vmatpush3.msra.mxu1 %v2741_v57 }
 0x6e8   : > { %v4883_v11 = vpop.f32.mrf.mxu0  ;;  %4908 = vmatprep.subr.mxu1 %v2740_v3 }
 0x6e9   : > { %4909 = vmatpush3.msra.mxu1 %v2740_v3  ;;  %v3014_v5 = vadd.f32 %v4883_v11, %v4562_v29 }
 0x6ea   : > { %v3008_v26 = vpop.f32.mrf.mxu0  ;;  %4910 = vmatprep.subr.mxu1 %v2739_v4 }
 0x6eb   : > { %v3009_v15 = vadd.f32 %v4562_v29, %v3008_v26  ;;  %4911 = vmatpush3.msra.mxu1 %v2739_v4 }
 0x6ec   : > { %4912 = vmatprep.subr.mxu1 %v2738_v6 }
 0x6ed   : > { %4913 = vmatpush3.msra.mxu1 %v2738_v6  ;;  %4914 = vmatprep.mubr.msk.f32.mxu1 %vm2626_vm9, %v3009_v15 }
 0x6ee   : > { %4915 = vmatmul.mubr.msk.f32.vlgmr.msra.gmra.mxu1 %vm2626_vm9, %v3014_v5  ;;  %v2743_v5 = vld [vmem:[%s6076_s26] sm:$0xff] }
 0x7a6   : > { %v4894_v9 = vpop.f32.mrf.mxu1  ;;  %v4905_v10 = vpop.f32.mrf.mxu0 }
 0x7a7   : > { %v5875_v12 = vadd.f32 %v4905_v10, %v4568_v8  ;;  %v5901_v20 = vadd.f32 %v4894_v9, %v4565_v28 }
 0x7a8   : > { %v3095_v30 = vpop.f32.mrf.mxu1  ;;  %v3182_v16 = vpop.f32.mrf.mxu0 }
 0x7a9   : > { %v5880_v32 = vadd.f32 %v4565_v28, %v3095_v30  ;;  %v5882_v33 = vadd.f32 %v4568_v8, %v3182_v16  ;;  %3484 = vrot.lane.b32.xlu0 %v5875_v12, %s5095_s3  ;;  %4917 = vmatprep.subr.msk.mxu0 %vm871_vm0, %v5875_v12  ;;  %v2744_v28 = vld [vmem:[%s6076_s26 + $0x8] sm:$0xff] }
 0x7aa   : > { %4918 = vmatpush3.xpose.msk.msra.mxu0 %vm871_vm0, %v5875_v12 }
 0x7ab   : > { %4921 = vmatprep.mubr.msk.f32.mxu0 %vm871_vm0, %v5880_v32  ;;  %3482 = vrot.lane.b32.xlu1 %v5882_v33, %s5095_s3 }
 0x7ac   : > { %4919 = vmatprep.subr.msk.mxu0 %vm871_vm0, %v5882_v33 }
 0x7ae   : > { %v4916_v23 = vpop.f32.mrf.mxu1  ;;  %4920 = vmatpush3.xpose.msk.msra.mxu0 %vm871_vm0, %v5882_v33 }
 0x7af   : > { %v5903_v52 = vadd.f32 %v4916_v23, %v4571_v34  ;;  %3478 = vrot.lane.b32.xlu1 %v5880_v32, %s5095_s3 }
 0x7b0   : > { %v3269_v40 = vpop.f32.mrf.mxu1 }
 0x7b1   : > { %v5907_v24 = vadd.f32 %v4571_v34, %v3269_v40  ;;  %4924 = vmatprep.subr.msk.mxu1 %vm3399_vm10, %v5903_v52  ;;  %4922 = vmatmul.mubr.msk.f32.vlgmr.msra.gmra.mxu0 %vm871_vm0, %v5901_v20 }
 0x7b2   : > { %4925 = vmatpush3.msk.msra.mxu1 %vm3399_vm10, %v5903_v52 }
 0x7b3   : > { %4926 = vmatprep.subr.mxu1 %v5907_v24  ;;  %3480 = vrot.lane.b32.xlu1 %v5901_v20, %s5095_s3 }
 0x7b4   : > { %4927 = vmatpush3.msra.mxu1 %v5907_v24 }
 0x81b   : > { %v3485_v41 = vpop.permute.xlu0 %3484 }
 0x81c   : > { %4931 = vmatprep.subr.msk.mxu0 %vm871_vm0, %v3485_v41 }
 0x81d   : > { %v3483_v43 = vpop.permute.xlu1 %3482  ;;  %4932 = vmatpush3.xpose.msk.msra.mxu0 %vm871_vm0, %v3485_v41 }
 0x81e   : > { %4933 = vmatprep.subr.msk.mxu0 %vm871_vm0, %v3483_v43 }
 0x821   : > { %v3479_v18 = vpop.permute.xlu1 %3478  ;;  %4934 = vmatpush3.xpose.msk.msra.mxu0 %vm871_vm0, %v3483_v43 }
 0x822   : > { %4935 = vmatprep.mubr.msk.f32.mxu0 %vm871_vm0, %v3479_v18  ;;  %4950 = vmatprep.subr.mxu0 %v2743_v5 }
 0x825   : > { %v3481_v21 = vpop.permute.xlu1 %3480 }
 0x826   : > { %4936 = vmatmul.mubr.msk.f32.vlgmr.msra.gmra.mxu0 %vm871_vm0, %v3481_v21 }
 0x827   : > { %4951 = vmatpush3.msra.mxu0 %v2743_v5 }
 0x871   : > { %v4923_v19 = vpop.f32.mrf.mxu0 }
 0x872   : > { %v3366_v49 = vmul.f32 0.35355338, %v4923_v19 }
 0x873   : > { %v3356_v39 = vpop.f32.mrf.mxu0 }
 0x874   : > { %v3365_v47 = vmul.f32 0.35355338, %v3356_v39  ;;  %v3368_v7 = vadd.f32 %v3366_v49, %v5928_v42 }
 0x876   : > { %v3374_v44 = vsel %vm3373_vm11, %v3368_v7, -inf  ;;  %v3367_v22 = vadd.f32 %v3365_v47, %v5933_v14 }
 0x877   : > { %3375 = vmax.xlane.f32.xlu1 %v3374_v44 }
 0x878   : > { %v3370_v35 = vsel %vm3369_vm12, %v3367_v22, -inf }
 0x879   : > { %3371 = vmax.xlane.f32.xlu0 %v3370_v35 }
 0x8e6   : > { %v4937_v46 = vpop.f32.mrf.mxu0 }
 0x8e7   : > { %v3570_v58 = vmul.f32 0.35355338, %v4937_v46 }
 0x8e8   : > { %v3560_v27 = vpop.f32.mrf.mxu0 }
 0x8e9   : > { %v3569_v25 = vmul.f32 0.35355338, %v3560_v27  ;;  %v3572_v38 = vadd.f32 %v3570_v58, %v5928_v42 }
 0x8eb   : > { %v3571_v45 = vadd.f32 %v3569_v25, %v5933_v14  ;;  %v3576_v37 = vsel %vm3373_vm11, %v3572_v38, -inf }
 0x8ed   : > { %v3573_v59 = vsel %vm3369_vm12, %v3571_v45, -inf }
 0x8ee   : > { %3574 = vmax.xlane.f32.xlu0 %v3573_v59 }
 0x8f2   : > { %3577 = vmax.xlane.f32.xlu0 %v3576_v37 }
 0x900   : > { %v3376_v48 = vpop.xlane.xlu1 %3375 }
 0x901   : > { %v3378_v50 = vsub.f32 %v3368_v7, %v3376_v48 }
 0x902   : > { %v3372_v36 = vpop.xlane.xlu0 %3371 }
 0x903   : > { %v3381_v17 = vmul.f32 1.442695, %v3378_v50  ;;  %v3377_v51 = vsub.f32 %v3367_v22, %v3372_v36 }
 0x905   : > { %5054 = vpow2.f32 %v3381_v17  ;;  %v3379_v54 = vmul.f32 1.442695, %v3377_v51 }
 0x907   : > { %5056 = vpow2.f32 %v3379_v54 }
 0x912   : > { %v5055_v53 = vpop.eup %5054 }
 0x913   : > { %v3386_v55 = vsel %vm3373_vm11, %v5055_v53, 0.0 }
 0x914   : > { %v5057_v57 = vpop.eup %5056  ;;  %3387 = vadd.xlane.f32.xlu1 %v3386_v55 }
 0x915   : > { %v3383_v56 = vsel %vm3369_vm12, %v5057_v57, 0.0 }
 0x916   : > { %3384 = vadd.xlane.f32.xlu0 %v3383_v56 }
 0x977   : > { %v3575_v31 = vpop.xlane.xlu0 %3574 }
 0x978   : > { %v3579_v2 = vsub.f32 %v3571_v45, %v3575_v31 }
 0x97a   : > { %v3581_v60 = vmul.f32 1.442695, %v3579_v2 }
 0x97b   : > { %v3578_v0 = vpop.xlane.xlu0 %3577 }
 0x97c   : > { %5058 = vpow2.f32 %v3581_v60  ;;  %v3580_v61 = vsub.f32 %v3572_v38, %v3578_v0 }
 0x97e   : > { %v3583_v62 = vmul.f32 1.442695, %v3580_v61 }
 0x980   : > { %5060 = vpow2.f32 %v3583_v62 }
 0x989   : > { %v5059_v63 = vpop.eup %5058 }
 0x98a   : > { %v3585_v13 = vsel %vm3369_vm12, %v5059_v63, 0.0 }
 0x98b   : > { %3586 = vadd.xlane.f32.xlu0 %v3585_v13 }
 0x98d   : > { %v5061_v1 = vpop.eup %5060 }
 0x98e   : > { %v3588_v3 = vsel %vm3373_vm11, %v5061_v1, 0.0 }
 0x98f   : > { %3589 = vadd.xlane.f32.xlu1 %v3588_v3 }
 0x99d   : > { %v3388_v4 = vpop.xlane.xlu1 %3387 }
 0x99e   : > { %5062 = vrcp.f32 %v3388_v4 }
 0x99f   : > { %v3385_v11 = vpop.xlane.xlu0 %3384 }
 0x9a0   : > { %5064 = vrcp.f32 %v3385_v11  ;;  %3596 = vrot.lane.b32.xlu1 %v5907_v24, %s5095_s3 }
 0x9a1   : > { %3598 = vrot.lane.b32.xlu0 %v5903_v52, %s5095_s3 }
 0x9a4   : > { %3852 = vrot.lane.b32.xlu1 %v5875_v12, %s5096_s4 }
 0x9a5   : > { %3846 = vrot.lane.b32.xlu0 %v5880_v32, %s5096_s4 }
 0x9a8   : > { %3850 = vrot.lane.b32.xlu1 %v5882_v33, %s5096_s4 }
 0x9a9   : > { %4140 = vrot.lane.b32.xlu0 %v5875_v12, %s5097_s30 }
 0x9ab   : > { %v5063_v29 = vpop.eup %5062 }
 0x9ac   : > { %3848 = vrot.lane.b32.xlu1 %v5901_v20, %s5096_s4  ;;  %v3392_v15 = vmul.f32 %v5063_v29, %v5055_v53 }
 0x9ad   : > { %v5065_v6 = vpop.eup %5064  ;;  %4134 = vrot.lane.b32.xlu0 %v5880_v32, %s5097_s30 }
 0x9ae   : > { %v3391_v26 = vmul.f32 %v5065_v6, %v5057_v57 }
 0x9b0   : > { %4138 = vrot.lane.b32.xlu1 %v5882_v33, %s5097_s30  ;;  %4928 = vmatprep.mubr.msk.f32.mxu1 %vm3369_vm12, %v3391_v26 }
 0x9b1   : > { %4929 = vmatmul.mubr.msk.f32.vlgmr.msra.gmra.mxu1 %vm3369_vm12, %v3392_v15 }
 0x9b4   : > { %4136 = vrot.lane.b32.xlu1 %v5901_v20, %s5097_s30 }
 0xa14   : > { %v3587_v8 = vpop.xlane.xlu0 %3586 }
 0xa15   : > { %5066 = vrcp.f32 %v3587_v8 }
 0xa18   : > { %v3590_v9 = vpop.xlane.xlu1 %3589  ;;  %v3599_v10 = vpop.permute.xlu0 %3598 }
 0xa19   : > { %5068 = vrcp.f32 %v3590_v9  ;;  %4938 = vmatprep.subr.msk.mxu1 %vm3399_vm10, %v3599_v10 }
 0xa1a   : > { %4939 = vmatpush3.msk.msra.mxu1 %vm3399_vm10, %v3599_v10 }
 0xa1c   : > { %v3597_v12 = vpop.permute.xlu1 %3596  ;;  %v3847_v40 = vpop.permute.xlu0 %3846 }
 0xa1d   : > { %4940 = vmatprep.subr.mxu1 %v3597_v12 }
 0xa1e   : > { %4941 = vmatpush3.msra.mxu1 %v3597_v12 }
 0xa1f   : > { %4945 = vmatprep.subr.mxu1 %v2744_v28 }
 0xa20   : > { %v3853_v34 = vpop.permute.xlu1 %3852  ;;  %v4141_v21 = vpop.permute.xlu0 %4140 }
 0xa22   : > { %v5067_v30 = vpop.eup %5066 }
 0xa23   : > { %v3593_v16 = vmul.f32 %v5067_v30, %v5059_v63 }
 0xa24   : > { %v3851_v43 = vpop.permute.xlu1 %3850  ;;  %v4135_v49 = vpop.permute.xlu0 %4134 }
 0xa25   : > { %4942 = vmatprep.mubr.msk.f32.mxu1 %vm3369_vm12, %v3593_v16 }
 0xa26   : > { %v5069_v32 = vpop.eup %5068 }
 0xa27   : > { %v3594_v33 = vmul.f32 %v5069_v32, %v5061_v1 }
 0xa28   : > { %v3849_v19 = vpop.permute.xlu1 %3848 }
 0xa29   : > { %4943 = vmatmul.mubr.msk.f32.vlgmr.msra.gmra.mxu1 %vm3369_vm12, %v3594_v33 }
 0xa2a   : > { %4946 = vmatpush3.msra.mxu1 %v2744_v28 }
 0xa2b   : > { %4955 = vmatprep.subr.msk.mxu1 %vm871_vm0, %v3853_v34 }
 0xa2c   : > { %v4139_v39 = vpop.permute.xlu1 %4138 }
 0xa30   : > { %v4137_v47 = vpop.permute.xlu1 %4136 }
 0xa71   : > { %v4930_v23 = vpop.f32.mrf.mxu1 }
 0xa73   : > { %v3469_v20 = vpop.f32.mrf.mxu1 }
 0xa74   : > { %4952 = vmatprep.mubr.msk.f32.mxu0 %vm871_vm0, %v3469_v20 }
 0xa75   : > { %4953 = vmatmul.mubr.msk.f32.vlgmr.msra.gmra.mxu0 %vm871_vm0, %v4930_v23 }
 0xae9   : > { %v4944_v41 = vpop.f32.mrf.mxu1 }
 0xaeb   : > { %v3675_v18 = vpop.f32.mrf.mxu1 }
 0xaec   : > { %4947 = vmatprep.mubr.msk.f32.mxu1 %vm871_vm0, %v3675_v18 }
 0xaed   : > { %4948 = vmatmul.mubr.msk.f32.vlgmr.msra.gmra.mxu1 %vm871_vm0, %v4944_v41 }
 0xaee   : > { %4956 = vmatpush3.xpose.msk.msra.mxu1 %vm871_vm0, %v3853_v34  ;;  %4959 = vmatprep.mubr.msk.f32.mxu1 %vm871_vm0, %v3847_v40 }
 0xaef   : > { %4957 = vmatprep.subr.msk.mxu1 %vm871_vm0, %v3851_v43 }
 0xaf2   : > { %4958 = vmatpush3.xpose.msk.msra.mxu1 %vm871_vm0, %v3851_v43 }
 0xaf3   : > { %4974 = vmatprep.subr.msk.mxu1 %vm871_vm0, %v4141_v21 }
 0xaf5   : > { %4960 = vmatmul.mubr.msk.f32.vlgmr.msra.gmra.mxu1 %vm871_vm0, %v3849_v19 }
 0xaf6   : > { %4975 = vmatpush3.xpose.msk.msra.mxu1 %vm871_vm0, %v4141_v21  ;;  %4978 = vmatprep.mubr.msk.f32.mxu1 %vm871_vm0, %v4135_v49  ;;  %v2746_v21 = vld [vmem:[%s6076_s26 + $0x18] sm:$0xff] }
 0xaf7   : > { %4976 = vmatprep.subr.msk.mxu1 %vm871_vm0, %v4139_v39 }
 0xafa   : > { %4977 = vmatpush3.xpose.msk.msra.mxu1 %vm871_vm0, %v4139_v39 }
 0xafd   : > { %4979 = vmatmul.mubr.msk.f32.vlgmr.msra.gmra.mxu1 %vm871_vm0, %v4137_v47 }
 0xb35   : > { %v4954_v32 = vpop.f32.mrf.mxu0 }
 0xb37   : > { %v3837_v33 = vpop.f32.mrf.mxu0 }
 0xbad   : > { %v5995_v7 = vpop.f32.mrf.mxu1 }
 0xbae   : > { %v3843_v19 = vadd.f32 %v4954_v32, %v5995_v7 }
 0xbaf   : > { %v5997_v44 = vpop.f32.mrf.mxu1 }
 0xbb0   : > { %v3838_v39 = vadd.f32 %v3837_v33, %v5997_v44 }
 0xbb5   : > { %v4961_v22 = vpop.f32.mrf.mxu1 }
 0xbb6   : > { %v3938_v35 = vmul.f32 0.35355338, %v4961_v22 }
 0xbb7   : > { %v3928_v46 = vpop.f32.mrf.mxu1 }
 0xbb8   : > { %v3937_v27 = vmul.f32 0.35355338, %v3928_v46  ;;  %v3940_v58 = vadd.f32 %v3938_v35, %v5928_v42 }
 0xbba   : > { %v3944_v25 = vsel %vm3373_vm11, %v3940_v58, -inf  ;;  %v3939_v45 = vadd.f32 %v3937_v27, %v5933_v14 }
 0xbbb   : > { %3945 = vmax.xlane.f32.xlu1 %v3944_v25 }
 0xbbc   : > { %v3941_v59 = vsel %vm3369_vm12, %v3939_v45, -inf }
 0xbbd   : > { %3942 = vmax.xlane.f32.xlu0 %v3941_v59  ;;  %v4980_v38 = vpop.f32.mrf.mxu1 }
 0xbbe   : > { %v4226_v63 = vmul.f32 0.35355338, %v4980_v38 }
 0xbbf   : > { %v4216_v37 = vpop.f32.mrf.mxu1 }
 0xbc0   : > { %v4225_v48 = vmul.f32 0.35355338, %v4216_v37  ;;  %v4228_v13 = vadd.f32 %v4226_v63, %v5928_v42  ;;  %v2745_v42 = vld [vmem:[%s6076_s26 + $0x10] sm:$0xff] }
 0xbc2   : > { %v4227_v50 = vadd.f32 %v4225_v48, %v5933_v14  ;;  %v4232_v1 = vsel %vm3373_vm11, %v4228_v13, -inf }
 0xbc4   : > { %v4229_v36 = vsel %vm3369_vm12, %v4227_v50, -inf }
 0xbcc   : > { %3963 = vrot.lane.b32.xlu1 %v5907_v24, %s5096_s4 }
 0xbf0   : > { %4230 = vmax.xlane.f32.xlu1 %v4229_v36 }
 0xc44   : > { %v3946_v17 = vpop.xlane.xlu1 %3945 }
 0xc45   : > { %v3948_v51 = vsub.f32 %v3940_v58, %v3946_v17  ;;  %v4610_v58 = vld [vmem:[%s6077_s27] ss:$0 sm:$0xff] }
 0xc46   : > { %v3943_v54 = vpop.xlane.xlu0 %3942 }
 0xc47   : > { %v3951_v53 = vmul.f32 1.442695, %v3948_v51  ;;  %v3947_v55 = vsub.f32 %v3939_v45, %v3943_v54 }
 0xc48   : > { %v3964_v14 = vpop.permute.xlu1 %3963 }
 0xc49   : > { %5070 = vpow2.f32 %v3951_v53  ;;  %v3949_v57 = vmul.f32 1.442695, %v3947_v55 }
 0xc4b   : > { %5072 = vpow2.f32 %v3949_v57 }
 0xc56   : > { %v5071_v56 = vpop.eup %5070 }
 0xc57   : > { %v3956_v31 = vsel %vm3373_vm11, %v5071_v56, 0.0 }
 0xc58   : > { %v5073_v2 = vpop.eup %5072  ;;  %3957 = vadd.xlane.f32.xlu0 %v3956_v31 }
 0xc59   : > { %v3953_v60 = vsel %vm3369_vm12, %v5073_v2, 0.0 }
 0xc5c   : > { %3954 = vadd.xlane.f32.xlu0 %v3953_v60 }
 0xc72   : > { %3965 = vrot.lane.b32.xlu0 %v5903_v52, %s5096_s4 }
 0xc79   : > { %v4231_v0 = vpop.xlane.xlu1 %4230 }
 0xc7a   : > { %v4235_v61 = vsub.f32 %v4227_v50, %v4231_v0 }
 0xc7c   : > { %v4237_v62 = vmul.f32 1.442695, %v4235_v61 }
 0xc7e   : > { %5074 = vpow2.f32 %v4237_v62 }
 0xc8b   : > { %v5075_v3 = vpop.eup %5074 }
 0xc8c   : > { %v4241_v4 = vsel %vm3369_vm12, %v5075_v3, 0.0 }
 0xc91   : > { %4233 = vmax.xlane.f32.xlu0 %v4232_v1 }
 0xc95   : > { %4242 = vadd.xlane.f32.xlu0 %v4241_v4 }
 0xcab   : > { %4253 = vrot.lane.b32.xlu0 %v5903_v52, %s5097_s30 }
 0xce1   : > { %v3958_v11 = vpop.xlane.xlu0 %3957 }
 0xce2   : > { %5076 = vrcp.f32 %v3958_v11 }
 0xce5   : > { %v3955_v29 = vpop.xlane.xlu0 %3954 }
 0xce6   : > { %5078 = vrcp.f32 %v3955_v29 }
 0xce9   : > { %v3966_v6 = vpop.permute.xlu0 %3965 }
 0xcea   : > { %4962 = vmatprep.subr.msk.mxu0 %vm3399_vm10, %v3966_v6 }
 0xceb   : > { %4963 = vmatpush3.msk.msra.mxu0 %vm3399_vm10, %v3966_v6 }
 0xcec   : > { %4964 = vmatprep.subr.mxu0 %v3964_v14 }
 0xced   : > { %4965 = vmatpush3.msra.mxu0 %v3964_v14 }
 0xcee   : > { %4969 = vmatprep.subr.mxu0 %v2745_v42 }
 0xcef   : > { %v5077_v26 = vpop.eup %5076 }
 0xcf0   : > { %v3962_v52 = vmul.f32 %v5077_v26, %v5071_v56 }
 0xcf3   : > { %v5079_v15 = vpop.eup %5078 }
 0xcf4   : > { %v3961_v5 = vmul.f32 %v5079_v15, %v5073_v2 }
 0xcf6   : > { %4966 = vmatprep.mubr.msk.f32.mxu0 %vm3369_vm12, %v3961_v5 }
 0xcf7   : > { %4967 = vmatmul.mubr.msk.f32.vlgmr.msra.gmra.mxu0 %vm3369_vm12, %v3962_v52 }
 0xcf8   : > { %4970 = vmatpush3.msra.mxu0 %v2745_v42 }
 0xd1a   : > { %v4234_v8 = vpop.xlane.xlu0 %4233 }
 0xd1b   : > { %v4236_v9 = vsub.f32 %v4228_v13, %v4234_v8 }
 0xd1d   : > { %v4239_v10 = vmul.f32 1.442695, %v4236_v9 }
 0xd1e   : > { %v4243_v12 = vpop.xlane.xlu0 %4242 }
 0xd1f   : > { %5080 = vpow2.f32 %v4239_v10 }
 0xd20   : > { %5082 = vrcp.f32 %v4243_v12 }
 0xd22   : > { %v4254_v28 = vpop.permute.xlu0 %4253 }
 0xd23   : > { %4981 = vmatprep.subr.msk.mxu0 %vm3399_vm10, %v4254_v28 }
 0xd2c   : > { %v5081_v30 = vpop.eup %5080 }
 0xd2d   : > { %v4244_v16 = vsel %vm3373_vm11, %v5081_v30, 0.0  ;;  %v5083_v34 = vpop.eup %5082 }
 0xd2e   : > { %4245 = vadd.xlane.f32.xlu1 %v4244_v16  ;;  %v4249_v41 = vmul.f32 %v5083_v34, %v5075_v3 }
 0xd3f   : > { %4251 = vrot.lane.b32.xlu1 %v5907_v24, %s5097_s30  ;;  %s4613_s30 = sshll.u32 %s6110_s5, 4 }
 0xd40   : > { %s845_s11 = scalar_lea.vmem %s6078_s28, %s4613_s30 }
 0xdb7   : > { %v4968_v23 = vpop.f32.mrf.mxu0  ;;  %v4246_v20 = vpop.xlane.xlu1 %4245 }
 0xdb8   : > { %5084 = vrcp.f32 %v4246_v20 }
 0xdb9   : > { %v4042_v40 = vpop.f32.mrf.mxu0 }
 0xdba   : > { %4971 = vmatprep.mubr.msk.f32.mxu0 %vm871_vm0, %v4042_v40 }
 0xdbb   : > { %4972 = vmatmul.mubr.msk.f32.vlgmr.msra.gmra.mxu0 %vm871_vm0, %v4968_v23  ;;  %v4252_v43 = vpop.permute.xlu1 %4251 }
 0xdbc   : > { %4982 = vmatpush3.msk.msra.mxu0 %vm3399_vm10, %v4254_v28  ;;  %4985 = vmatprep.mubr.msk.f32.mxu0 %vm3369_vm12, %v4249_v41 }
 0xdbd   : > { %4983 = vmatprep.subr.mxu0 %v4252_v43 }
 0xdbe   : > { %4984 = vmatpush3.msra.mxu0 %v4252_v43 }
 0xdbf   : > { %4988 = vmatprep.subr.mxu0 %v2746_v21 }
 0xdc5   : > { %v5085_v24 = vpop.eup %5084 }
 0xdc6   : > { %v4250_v18 = vmul.f32 %v5085_v24, %v5081_v30 }
 0xdc8   : > { %4986 = vmatmul.mubr.msk.f32.vlgmr.msra.gmra.mxu0 %vm3369_vm12, %v4250_v18 }
 0xdc9   : > { %4989 = vmatpush3.msra.mxu0 %v2746_v21 }
 0xe7b   : > { %v4973_v49 = vpop.f32.mrf.mxu0 }
 0xe7c   : > { %v4133_v47 = vadd.f32 %v4973_v49, %v3843_v19 }
 0xe7d   : > { %v4123_v22 = vpop.f32.mrf.mxu0 }
 0xe7e   : > { %v4132_v35 = vadd.f32 %v4123_v22, %v3838_v39 }
 0xe88   : > { %v4987_v46 = vpop.f32.mrf.mxu0 }
 0xe8a   : > { %v4330_v27 = vpop.f32.mrf.mxu0 }
 0xe8b   : > { %4990 = vmatprep.mubr.msk.f32.mxu0 %vm871_vm0, %v4330_v27 }
 0xe8c   : > { %4991 = vmatmul.mubr.msk.f32.vlgmr.msra.gmra.mxu0 %vm871_vm0, %v4987_v46 }
 0xf4c   : > { %v4992_v25 = vpop.f32.mrf.mxu0 }
 0xf4d   : > { %v4421_v45 = vadd.f32 %v4992_v25, %v4133_v47 }
 0xf4e   : > { %v4411_v7 = vpop.f32.mrf.mxu0 }
 0xf4f   : > { %v4429_v44 = vadd.f32 %v4610_v58, %v4421_v45  ;;  %v4420_v59 = vadd.f32 %v4411_v7, %v4132_v35 }
 0xf51   : > { %4432 = vst.msk [vmem:[%s845_s11 + $0x8] sm:$0xf] %vm4431_vm13, %v4429_v44  ;;  %v4428_v38 = vadd.f32 %v4610_v58, %v4420_v59 }
 0xf53   : > { %4430 = vst.msk [vmem:[%s845_s11] sm:$0xff] %vm2626_vm9, %v4428_v38 }
 0xf54 PF: > { %s38_s8 = sadd.s32 1, %s5092_s8  }
 0xf55   : > { %p35_p4 = scmp.ge.s32.totalorder %s38_s8, 4  }
 0xf57   :  { %37 = sbr.rel (!%p35_p4) target bundleno = 14 (0xe), region = 162 }

</bundles_post_ra>
